<compile_context>
chip_gen: v6e
topology: v6e:2x2x1
jax: 0.10.0
libtpu: 0.0.40
codegen_flags: <defaults>
</compile_context>

<pallas_src>
import numpy as np
import jax
import jax.numpy as jnp
from jax.experimental import pallas as pl
from jax.experimental.pallas import tpu as pltpu


# ----------------------------------------------------------------------------
# Host-side constant builders (weights are static at deployment time)
# ----------------------------------------------------------------------------
def interp_matrix(out_size, in_size):
    """Bilinear align_corners=True interpolation matrix (out_size, in_size)."""
    o = np.arange(out_size)
    if out_size == 1:
        src = np.zeros(out_size, dtype=np.float64)
    else:
        src = o * (in_size - 1) / (out_size - 1)
    i0 = np.clip(np.floor(src).astype(np.int64), 0, in_size - 1)
    i1 = np.clip(i0 + 1, 0, in_size - 1)
    frac = src - i0
    A = np.zeros((out_size, in_size), dtype=np.float32)
    A[o, i0] += (1.0 - frac).astype(np.float32)
    A[o, i1] += frac.astype(np.float32)
    return A


def conv_row_mats(w_hwio, w_in, padding):
    """Banded matrices for a stride-1 conv in packed (H, W*C) layout.

    Returns M of shape (KH, w_in*Cin, w_out*Cout) such that
        out[h] = sum_dy rowpadded_in[h + dy] @ M[dy]
    where rowpadded_in has `padding` zero rows added above/below the input and
    the horizontal zero-padding is already folded into M.
    """
    w = np.asarray(w_hwio, np.float32)
    KH, KW, Ci, Co = w.shape
    w_out = w_in + 2 * padding - KW + 1
    M = np.zeros((KH, w_in * Ci, w_out * Co), np.float32)
    for dy in range(KH):
        for wo in range(w_out):
            for dx in range(KW):
                wi = wo + dx - padding
                if 0 <= wi < w_in:
                    M[dy, wi * Ci:(wi + 1) * Ci, wo * Co:(wo + 1) * Co] = w[dy, dx]
    return M


# ----------------------------------------------------------------------------
# Fused DecoderBlock Pallas kernel (one batch element per grid step)
# ----------------------------------------------------------------------------
def make_decoder_kernel(H, use_convm):
    """H = encoder spatial height (== width-independent); static convm flag."""

    def kernel(*refs):
        if use_convm:
            (x_ref, skip_ref, ah_ref, awk_ref, mm_ref, bm_ref,
             mwsu_ref, mwss_ref, bs_ref,
             mw1u_ref, mw1s_ref, b1_ref,
             mw2_ref, b2_ref,
             bn1su_ref, bn1bu_ref, bn1ss_ref, bn1bs_ref,
             bn2s_ref, bn2b_ref, o_ref) = refs
        else:
            (x_ref, skip_ref, ah_ref, awk_ref,
             mwsu_ref, mwss_ref, bs_ref,
             mw1u_ref, mw1s_ref, b1_ref,
             mw2_ref, b2_ref,
             bn1su_ref, bn1bu_ref, bn1ss_ref, bn1bs_ref,
             bn2s_ref, bn2b_ref, o_ref) = refs
            mm_ref = bm_ref = None

        f32 = jnp.float32

        def dotf(a, b):
            return jnp.dot(a, b, preferred_element_type=f32)

        def row_window(v, lo, hi):
            # Zero every row outside [lo, hi] (frame border maintenance).
            r = jax.lax.broadcasted_iota(jnp.int32, v.shape, 0)
            return jnp.where((r >= lo) & (r <= hi), v, 0.0)

        def conv_rows(frame, m_ref, start, n_rows):
            # out[r] = sum_dy frame[start + r + dy] @ m_ref[dy]
            kh = m_ref.shape[0]
            acc = dotf(frame[start:start + n_rows, :], m_ref[0])
            for dy in range(1, kh):
                acc = acc + dotf(frame[start + dy:start + dy + n_rows, :],
                                 m_ref[dy])
            return acc

        # ---- bilinear 2x upsample; Ah carries 2 zero rows top/bottom, so the
        #      result is a zero-bordered frame (rows 2..Ho+1 hold the data) ----
        x = x_ref[0]                                   # (Hi, Wi*Cin)
        t = dotf(ah_ref[...], x)                       # (Ho+4, Wi*Cin)
        up_frame = dotf(t, awk_ref[...])               # (Ho+4, Wo*Cin)

        # ---- optional convm (2x2, pad 0) when the skip width is odd ----
        if use_convm:
            cm = conv_rows(up_frame, mm_ref, 0, H + 4) + bm_ref[...]
            up_frame = row_window(cm, 2, H + 1)        # (H+4, W*Cin)

        skip_frame = skip_ref[0]                       # (H+4, W*Cskip), zero border

        # ---- skip branch: skipconv1 over cat = [up, skip] (weights split) ----
        s = (conv_rows(up_frame, mwsu_ref, 1, H)
             + conv_rows(skip_frame, mwss_ref, 1, H)
             + bs_ref[...])                            # (H, W*Co)

        # ---- main branch: bn1 -> relu -> conv1 -> bn2 -> relu -> conv2 ----
        # TODO(synk): dropout = identity (eval); BN folded running stats.
        a1u = row_window(
            jnp.maximum(up_frame * bn1su_ref[...] + bn1bu_ref[...], 0.0), 2, H + 1)
        a1s = row_window(
            jnp.maximum(skip_frame * bn1ss_ref[...] + bn1bs_ref[...], 0.0), 2, H + 1)
        # conv1 produced with one extra row top/bottom (garbage there) so that
        # bn2/relu + row_window yields a ready-padded input for conv2.
        y1 = (conv_rows(a1u, mw1u_ref, 0, H + 2)
              + conv_rows(a1s, mw1s_ref, 0, H + 2)
              + b1_ref[...])                           # (H+2, W*Co)
        a2 = row_window(
            jnp.maximum(y1 * bn2s_ref[...] + bn2b_ref[...], 0.0), 1, H)
        y2 = conv_rows(a2, mw2_ref, 0, H) + b2_ref[...]  # (H, W*Co)

        o_ref[0] = (y2 + s).astype(o_ref.dtype)

    return kernel


# ----------------------------------------------------------------------------
# DecoderBlock forward (public NCHW interface)
# ----------------------------------------------------------------------------
def decoder_block_forward(x_nchw, skip_nchw, p):
    B, Cin, Hi, Wi = x_nchw.shape
    _, Cskip, Hs, Ws = skip_nchw.shape
    Ho, Wo = 2 * Hi, 2 * Wi
    Co = p["w1"].shape[-1]
    use_convm = (int(Ws) % 2 != 0)
    H = Ho - 1 if use_convm else Ho
    W = Wo - 1 if use_convm else Wo
    assert (int(Hs), int(Ws)) == (H, W), "skip spatial size must match upsampled x"

    # ---------- host-side constants ----------
    Ah = interp_matrix(Ho, Hi)
    Aw = interp_matrix(Wo, Wi)
    ah_pad = np.pad(Ah, ((2, 2), (0, 0)))                          # (Ho+4, Hi)
    awk = np.kron(Aw.T, np.eye(Cin, dtype=np.float32))             # (Wi*Cin, Wo*Cin)

    w1 = np.asarray(p["w1"], np.float32)
    ws = np.asarray(p["ws"], np.float32)
    w2 = np.asarray(p["w2"], np.float32)
    mw1_u = conv_row_mats(w1[:, :, :Cin, :], W, 1)
    mw1_s = conv_row_mats(w1[:, :, Cin:, :], W, 1)
    mws_u = conv_row_mats(ws[:, :, :Cin, :], W, 1)
    mws_s = conv_row_mats(ws[:, :, Cin:, :], W, 1)
    mw2 = conv_row_mats(w2, W, 1)

    tile = lambda v: np.tile(np.asarray(v, np.float32), W)[None, :]
    b1_p, bs_p, b2_p = tile(p["b1"]), tile(p["bs"]), tile(p["b2"])
    bn1s = np.asarray(p["bn1_scale"], np.float32)
    bn1b = np.asarray(p["bn1_shift"], np.float32)
    bn1su, bn1bu = tile(bn1s[:Cin]), tile(bn1b[:Cin])
    bn1ss, bn1bs = tile(bn1s[Cin:]), tile(bn1b[Cin:])
    bn2s_p, bn2b_p = tile(p["bn2_scale"]), tile(p["bn2_shift"])

    # ---------- pack activations: NCHW -> (B, H, W*C) ----------
    x_packed = jnp.transpose(x_nchw, (0, 2, 3, 1)).reshape(B, Hi, Wi * Cin)
    skip_packed = jnp.transpose(skip_nchw, (0, 2, 3, 1)).reshape(B, H, W * Cskip)
    skip_frame = jnp.pad(skip_packed, ((0, 0), (2, 2), (0, 0)))    # zero border rows

    inputs = [x_packed, skip_frame, jnp.asarray(ah_pad), jnp.asarray(awk)]
    specs = [
        pl.BlockSpec((1, Hi, Wi * Cin), lambda b: (b, 0, 0)),
        pl.BlockSpec((1, H + 4, W * Cskip), lambda b: (b, 0, 0)),
        pl.BlockSpec(ah_pad.shape, lambda b: (0, 0)),
        pl.BlockSpec(awk.shape, lambda b: (0, 0)),
    ]
    if use_convm:
        mm = conv_row_mats(np.asarray(p["convm_w"], np.float32), Wo, 0)
        bm_p = tile(p["convm_b"])
        inputs += [jnp.asarray(mm), jnp.asarray(bm_p)]
        specs += [pl.BlockSpec(mm.shape, lambda b: (0, 0, 0)),
                  pl.BlockSpec(bm_p.shape, lambda b: (0, 0))]

    const_arrs = [mws_u, mws_s, bs_p, mw1_u, mw1_s, b1_p, mw2, b2_p,
                  bn1su, bn1bu, bn1ss, bn1bs, bn2s_p, bn2b_p]
    for c in const_arrs:
        inputs.append(jnp.asarray(c))
        if c.ndim == 3:
            specs.append(pl.BlockSpec(c.shape, lambda b: (0, 0, 0)))
        else:
            specs.append(pl.BlockSpec(c.shape, lambda b: (0, 0)))

    out_packed = pl.pallas_call(
        make_decoder_kernel(H, use_convm),
        out_shape=jax.ShapeDtypeStruct((B, H, W * Co), jnp.float32),
        grid=(B,),
        in_specs=specs,
        out_specs=pl.BlockSpec((1, H, W * Co), lambda b: (b, 0, 0)),
        compiler_params=pltpu.CompilerParams(dimension_semantics=("parallel",)),
    )(*inputs)

    return jnp.transpose(out_packed.reshape(B, H, W, Co), (0, 3, 1, 2))


# ----------------------------------------------------------------------------
# Pure-JAX reference (XLA ops) for a correctness check
# ----------------------------------------------------------------------------
def _conv_ref(x_nhwc, w_hwio, b, pad):
    out = jax.lax.conv_general_dilated(
        x_nhwc, w_hwio, window_strides=(1, 1),
        padding=[(pad, pad), (pad, pad)],
        dimension_numbers=("NHWC", "HWIO", "NHWC"))
    return out + b.reshape(1, 1, 1, -1)


def decoder_block_reference(x_nchw, skip_nchw, p):
    B, Cin, Hi, Wi = x_nchw.shape
    _, Cskip, Hs, Ws = skip_nchw.shape
    Ah = jnp.asarray(interp_matrix(2 * Hi, Hi))
    Aw = jnp.asarray(interp_matrix(2 * Wi, Wi))
    up = jnp.einsum("oh,bchw,pw->bcop", Ah, x_nchw, Aw)
    up_nhwc = jnp.transpose(up, (0, 2, 3, 1))
    if int(Ws) % 2 != 0:
        up_nhwc = _conv_ref(up_nhwc, p["convm_w"], p["convm_b"], 0)
    cat = jnp.concatenate([up_nhwc, jnp.transpose(skip_nchw, (0, 2, 3, 1))], axis=-1)
    a1 = jnp.maximum(cat * p["bn1_scale"].reshape(1, 1, 1, -1)
                     + p["bn1_shift"].reshape(1, 1, 1, -1), 0.0)
    y1 = _conv_ref(a1, p["w1"], p["b1"], 1)
    a2 = jnp.maximum(y1 * p["bn2_scale"].reshape(1, 1, 1, -1)
                     + p["bn2_shift"].reshape(1, 1, 1, -1), 0.0)
    y2 = _conv_ref(a2, p["w2"], p["b2"], 1)
    s = _conv_ref(cat, p["ws"], p["bs"], 1)
    return jnp.transpose(y2 + s, (0, 3, 1, 2))


# ----------------------------------------------------------------------------
# main
# ----------------------------------------------------------------------------
if __name__ == "__main__":
    key = jax.random.PRNGKey(0)
    ks = jax.random.split(key, 24)

    B = 2
    input_channel, output_channel = 8, 4          # DecoderBlock(8, 4)
    Hi = Wi = 8                                   # input spatial
    Cc = input_channel + output_channel           # EncoderBlock input channels = 12

    x = jax.random.normal(ks[0], (B, input_channel, Hi, Wi), jnp.float32)

    nrm = lambda k, shp: 0.1 * jax.random.normal(k, shp, jnp.float32)
    eps = 1e-5

    bn1_gamma = 1.0 + nrm(ks[2], (Cc,))
    bn1_beta = nrm(ks[3], (Cc,))
    bn1_mean = nrm(ks[4], (Cc,))
    bn1_var = jax.random.uniform(ks[5], (Cc,), jnp.float32, 0.5, 1.5)
    bn2_gamma = 1.0 + nrm(ks[6], (output_channel,))
    bn2_beta = nrm(ks[7], (output_channel,))
    bn2_mean = nrm(ks[8], (output_channel,))
    bn2_var = jax.random.uniform(ks[9], (output_channel,), jnp.float32, 0.5, 1.5)

    bn1_scale = bn1_gamma / jnp.sqrt(bn1_var + eps)
    bn2_scale = bn2_gamma / jnp.sqrt(bn2_var + eps)

    params = {
        # convm: Conv2d(input_channel, input_channel, k=2, pad=0)  (HWIO weights)
        "convm_w": nrm(ks[10], (2, 2, input_channel, input_channel)),
        "convm_b": nrm(ks[11], (input_channel,)),
        # EncoderBlock(Cc -> output_channel, stride 1)
        "bn1_scale": bn1_scale,
        "bn1_shift": bn1_beta - bn1_mean * bn1_scale,
        "w1": nrm(ks[12], (3, 3, Cc, output_channel)),
        "b1": nrm(ks[13], (output_channel,)),
        "bn2_scale": bn2_scale,
        "bn2_shift": bn2_beta - bn2_mean * bn2_scale,
        "w2": nrm(ks[14], (3, 3, output_channel, output_channel)),
        "b2": nrm(ks[15], (output_channel,)),
        "ws": nrm(ks[16], (3, 3, Cc, output_channel)),
        "bs": nrm(ks[17], (output_channel,)),
    }

    # Case 1: even skip width (convm does not fire).
    # Case 2: odd skip width (exercises the fused convm path).
    cases = [("even_skip", (2 * Hi, 2 * Wi)), ("odd_skip", (2 * Hi - 1, 2 * Wi - 1))]
    for name, (Hs, Ws) in cases:
        skip = jax.random.normal(ks[1], (B, output_channel, Hs, Ws), jnp.float32)
        out = jax.block_until_ready(decoder_block_forward(x, skip, params))
        ref = jax.block_until_ready(decoder_block_reference(x, skip, params))
        assert out.shape == (B, output_channel, Hs, Ws), (name, out.shape)
        err = float(jnp.max(jnp.abs(out - ref)))
        assert jnp.allclose(out, ref, atol=2e-3, rtol=2e-3), (name, err)

    print("KERNEL_OK")
</pallas_src>

<mosaic_0001>
module attributes {stable_mosaic.version = 11 : i64} {
  func.func @kernel(%arg0: i32, %arg1: memref<1x8x64xf32, #tpu.memory_space<vmem>>, %arg2: memref<1x20x64xf32, #tpu.memory_space<vmem>>, %arg3: memref<20x8xf32, #tpu.memory_space<vmem>>, %arg4: memref<64x128xf32, #tpu.memory_space<vmem>>, %arg5: memref<3x128x64xf32, #tpu.memory_space<vmem>>, %arg6: memref<3x64x64xf32, #tpu.memory_space<vmem>>, %arg7: memref<1x64xf32, #tpu.memory_space<vmem>>, %arg8: memref<3x128x64xf32, #tpu.memory_space<vmem>>, %arg9: memref<3x64x64xf32, #tpu.memory_space<vmem>>, %arg10: memref<1x64xf32, #tpu.memory_space<vmem>>, %arg11: memref<3x64x64xf32, #tpu.memory_space<vmem>>, %arg12: memref<1x64xf32, #tpu.memory_space<vmem>>, %arg13: memref<1x128xf32, #tpu.memory_space<vmem>>, %arg14: memref<1x128xf32, #tpu.memory_space<vmem>>, %arg15: memref<1x64xf32, #tpu.memory_space<vmem>>, %arg16: memref<1x64xf32, #tpu.memory_space<vmem>>, %arg17: memref<1x64xf32, #tpu.memory_space<vmem>>, %arg18: memref<1x64xf32, #tpu.memory_space<vmem>>, %arg19: memref<1x16x64xf32, #tpu.memory_space<vmem>>) attributes {dimension_semantics = [#tpu.dimension_semantics<parallel>], iteration_bounds = array<i64: 2>, scalar_prefetch = 0 : i64, scratch_operands = 0 : i64, tpu.core_type = #tpu.core_type<tc>, window_params = [{transform_indices = @transform_0, window_bounds = array<i64: 1, 8, 64>}, {transform_indices = @transform_1, window_bounds = array<i64: 1, 20, 64>}, {pipeline_mode = #tpu.pipeline_mode<synchronous>, transform_indices = @transform_2, window_bounds = array<i64: 20, 8>}, {pipeline_mode = #tpu.pipeline_mode<synchronous>, transform_indices = @transform_3, window_bounds = array<i64: 64, 128>}, {pipeline_mode = #tpu.pipeline_mode<synchronous>, transform_indices = @transform_4, window_bounds = array<i64: 3, 128, 64>}, {pipeline_mode = #tpu.pipeline_mode<synchronous>, transform_indices = @transform_5, window_bounds = array<i64: 3, 64, 64>}, {pipeline_mode = #tpu.pipeline_mode<synchronous>, transform_indices = @transform_6, window_bounds = array<i64: 1, 64>}, {pipeline_mode = #tpu.pipeline_mode<synchronous>, transform_indices = @transform_7, window_bounds = array<i64: 3, 128, 64>}, {pipeline_mode = #tpu.pipeline_mode<synchronous>, transform_indices = @transform_8, window_bounds = array<i64: 3, 64, 64>}, {pipeline_mode = #tpu.pipeline_mode<synchronous>, transform_indices = @transform_9, window_bounds = array<i64: 1, 64>}, {pipeline_mode = #tpu.pipeline_mode<synchronous>, transform_indices = @transform_10, window_bounds = array<i64: 3, 64, 64>}, {pipeline_mode = #tpu.pipeline_mode<synchronous>, transform_indices = @transform_11, window_bounds = array<i64: 1, 64>}, {pipeline_mode = #tpu.pipeline_mode<synchronous>, transform_indices = @transform_12, window_bounds = array<i64: 1, 128>}, {pipeline_mode = #tpu.pipeline_mode<synchronous>, transform_indices = @transform_13, window_bounds = array<i64: 1, 128>}, {pipeline_mode = #tpu.pipeline_mode<synchronous>, transform_indices = @transform_14, window_bounds = array<i64: 1, 64>}, {pipeline_mode = #tpu.pipeline_mode<synchronous>, transform_indices = @transform_15, window_bounds = array<i64: 1, 64>}, {pipeline_mode = #tpu.pipeline_mode<synchronous>, transform_indices = @transform_16, window_bounds = array<i64: 1, 64>}, {pipeline_mode = #tpu.pipeline_mode<synchronous>, transform_indices = @transform_17, window_bounds = array<i64: 1, 64>}, {transform_indices = @transform_18, window_bounds = array<i64: 1, 16, 64>}]} {
    %c0 = arith.constant 0 : index
    %c0_0 = arith.constant 0 : index
    %c0_1 = arith.constant 0 : index
    %0 = vector.load %arg1[%c0, %c0_0, %c0_1] : memref<1x8x64xf32, #tpu.memory_space<vmem>>, vector<1x8x64xf32>
    %1 = vector.shape_cast %0 : vector<1x8x64xf32> to vector<8x64xf32>
    %c0_2 = arith.constant 0 : index
    %c0_3 = arith.constant 0 : index
    %2 = vector.load %arg3[%c0_2, %c0_3] : memref<20x8xf32, #tpu.memory_space<vmem>>, vector<20x8xf32>
    %cst = arith.constant dense<0.000000e+00> : vector<20x64xf32>
    %3 = tpu.matmul %2, %1, %cst {dimension_numbers = #tpu.dot_dimension_numbers<[1], [0], [0], [1], [0, 0, 1, 1], [], []>} : vector<20x8xf32>, vector<8x64xf32>, vector<20x64xf32> -> vector<20x64xf32>
    %c0_4 = arith.constant 0 : index
    %c0_5 = arith.constant 0 : index
    %4 = vector.load %arg4[%c0_4, %c0_5] : memref<64x128xf32, #tpu.memory_space<vmem>>, vector<64x128xf32>
    %cst_6 = arith.constant dense<0.000000e+00> : vector<20x128xf32>
    %5 = tpu.matmul %3, %4, %cst_6 {dimension_numbers = #tpu.dot_dimension_numbers<[1], [0], [0], [1], [0, 0, 1, 1], [], []>} : vector<20x64xf32>, vector<64x128xf32>, vector<20x128xf32> -> vector<20x128xf32>
    %c0_7 = arith.constant 0 : index
    %c0_8 = arith.constant 0 : index
    %c0_9 = arith.constant 0 : index
    %6 = vector.load %arg2[%c0_7, %c0_8, %c0_9] : memref<1x20x64xf32, #tpu.memory_space<vmem>>, vector<1x20x64xf32>
    %7 = vector.shape_cast %6 : vector<1x20x64xf32> to vector<20x64xf32>
    %8 = vector.extract_strided_slice %5 {offsets = [1, 0], sizes = [16, 128], strides = [1, 1]} : vector<20x128xf32> to vector<16x128xf32>
    %c0_10 = arith.constant 0 : index
    %c0_11 = arith.constant 0 : index
    %c0_12 = arith.constant 0 : index
    %9 = vector.load %arg5[%c0_10, %c0_11, %c0_12] : memref<3x128x64xf32, #tpu.memory_space<vmem>>, vector<1x128x64xf32>
    %10 = vector.shape_cast %9 : vector<1x128x64xf32> to vector<128x64xf32>
    %cst_13 = arith.constant dense<0.000000e+00> : vector<16x64xf32>
    %11 = tpu.matmul %8, %10, %cst_13 {dimension_numbers = #tpu.dot_dimension_numbers<[1], [0], [0], [1], [0, 0, 1, 1], [], []>} : vector<16x128xf32>, vector<128x64xf32>, vector<16x64xf32> -> vector<16x64xf32>
    %12 = vector.extract_strided_slice %5 {offsets = [2, 0], sizes = [16, 128], strides = [1, 1]} : vector<20x128xf32> to vector<16x128xf32>
    %c1 = arith.constant 1 : index
    %c0_14 = arith.constant 0 : index
    %c0_15 = arith.constant 0 : index
    %13 = vector.load %arg5[%c1, %c0_14, %c0_15] : memref<3x128x64xf32, #tpu.memory_space<vmem>>, vector<1x128x64xf32>
    %14 = vector.shape_cast %13 : vector<1x128x64xf32> to vector<128x64xf32>
    %cst_16 = arith.constant dense<0.000000e+00> : vector<16x64xf32>
    %15 = tpu.matmul %12, %14, %cst_16 {dimension_numbers = #tpu.dot_dimension_numbers<[1], [0], [0], [1], [0, 0, 1, 1], [], []>} : vector<16x128xf32>, vector<128x64xf32>, vector<16x64xf32> -> vector<16x64xf32>
    %16 = arith.addf %11, %15 : vector<16x64xf32>
    %17 = vector.extract_strided_slice %5 {offsets = [3, 0], sizes = [16, 128], strides = [1, 1]} : vector<20x128xf32> to vector<16x128xf32>
    %c2 = arith.constant 2 : index
    %c0_17 = arith.constant 0 : index
    %c0_18 = arith.constant 0 : index
    %18 = vector.load %arg5[%c2, %c0_17, %c0_18] : memref<3x128x64xf32, #tpu.memory_space<vmem>>, vector<1x128x64xf32>
    %19 = vector.shape_cast %18 : vector<1x128x64xf32> to vector<128x64xf32>
    %cst_19 = arith.constant dense<0.000000e+00> : vector<16x64xf32>
    %20 = tpu.matmul %17, %19, %cst_19 {dimension_numbers = #tpu.dot_dimension_numbers<[1], [0], [0], [1], [0, 0, 1, 1], [], []>} : vector<16x128xf32>, vector<128x64xf32>, vector<16x64xf32> -> vector<16x64xf32>
    %21 = arith.addf %16, %20 : vector<16x64xf32>
    %22 = vector.extract_strided_slice %7 {offsets = [1, 0], sizes = [16, 64], strides = [1, 1]} : vector<20x64xf32> to vector<16x64xf32>
    %c0_20 = arith.constant 0 : index
    %c0_21 = arith.constant 0 : index
    %c0_22 = arith.constant 0 : index
    %23 = vector.load %arg6[%c0_20, %c0_21, %c0_22] : memref<3x64x64xf32, #tpu.memory_space<vmem>>, vector<1x64x64xf32>
    %24 = vector.shape_cast %23 : vector<1x64x64xf32> to vector<64x64xf32>
    %cst_23 = arith.constant dense<0.000000e+00> : vector<16x64xf32>
    %25 = tpu.matmul %22, %24, %cst_23 {dimension_numbers = #tpu.dot_dimension_numbers<[1], [0], [0], [1], [0, 0, 1, 1], [], []>} : vector<16x64xf32>, vector<64x64xf32>, vector<16x64xf32> -> vector<16x64xf32>
    %26 = vector.extract_strided_slice %7 {offsets = [2, 0], sizes = [16, 64], strides = [1, 1]} : vector<20x64xf32> to vector<16x64xf32>
    %c1_24 = arith.constant 1 : index
    %c0_25 = arith.constant 0 : index
    %c0_26 = arith.constant 0 : index
    %27 = vector.load %arg6[%c1_24, %c0_25, %c0_26] : memref<3x64x64xf32, #tpu.memory_space<vmem>>, vector<1x64x64xf32>
    %28 = vector.shape_cast %27 : vector<1x64x64xf32> to vector<64x64xf32>
    %cst_27 = arith.constant dense<0.000000e+00> : vector<16x64xf32>
    %29 = tpu.matmul %26, %28, %cst_27 {dimension_numbers = #tpu.dot_dimension_numbers<[1], [0], [0], [1], [0, 0, 1, 1], [], []>} : vector<16x64xf32>, vector<64x64xf32>, vector<16x64xf32> -> vector<16x64xf32>
    %30 = arith.addf %25, %29 : vector<16x64xf32>
    %31 = vector.extract_strided_slice %7 {offsets = [3, 0], sizes = [16, 64], strides = [1, 1]} : vector<20x64xf32> to vector<16x64xf32>
    %c2_28 = arith.constant 2 : index
    %c0_29 = arith.constant 0 : index
    %c0_30 = arith.constant 0 : index
    %32 = vector.load %arg6[%c2_28, %c0_29, %c0_30] : memref<3x64x64xf32, #tpu.memory_space<vmem>>, vector<1x64x64xf32>
    %33 = vector.shape_cast %32 : vector<1x64x64xf32> to vector<64x64xf32>
    %cst_31 = arith.constant dense<0.000000e+00> : vector<16x64xf32>
    %34 = tpu.matmul %31, %33, %cst_31 {dimension_numbers = #tpu.dot_dimension_numbers<[1], [0], [0], [1], [0, 0, 1, 1], [], []>} : vector<16x64xf32>, vector<64x64xf32>, vector<16x64xf32> -> vector<16x64xf32>
    %35 = arith.addf %30, %34 : vector<16x64xf32>
    %36 = arith.addf %21, %35 : vector<16x64xf32>
    %c0_32 = arith.constant 0 : index
    %c0_33 = arith.constant 0 : index
    %37 = vector.load %arg7[%c0_32, %c0_33] : memref<1x64xf32, #tpu.memory_space<vmem>>, vector<1x64xf32>
    %38 = vector.broadcast %37 : vector<1x64xf32> to vector<16x64xf32>
    %39 = arith.addf %36, %38 : vector<16x64xf32>
    %c0_34 = arith.constant 0 : index
    %c0_35 = arith.constant 0 : index
    %40 = vector.load %arg13[%c0_34, %c0_35] : memref<1x128xf32, #tpu.memory_space<vmem>>, vector<1x128xf32>
    %41 = vector.broadcast %40 : vector<1x128xf32> to vector<20x128xf32>
    %42 = arith.mulf %5, %41 : vector<20x128xf32>
    %c0_36 = arith.constant 0 : index
    %c0_37 = arith.constant 0 : index
    %43 = vector.load %arg14[%c0_36, %c0_37] : memref<1x128xf32, #tpu.memory_space<vmem>>, vector<1x128xf32>
    %44 = vector.broadcast %43 : vector<1x128xf32> to vector<20x128xf32>
    %45 = arith.addf %42, %44 : vector<20x128xf32>
    %cst_38 = arith.constant 0.000000e+00 : f32
    %46 = vector.broadcast %cst_38 : f32 to vector<20x128xf32>
    %47 = arith.maximumf %45, %46 : vector<20x128xf32>
    %48 = tpu.iota {dimensions = array<i32: 0>} : vector<20x128xi32>
    %c2_i32 = arith.constant 2 : i32
    %49 = vector.broadcast %c2_i32 : i32 to vector<20x128xi32>
    %50 = arith.cmpi sge, %48, %49 : vector<20x128xi32>
    %c17_i32 = arith.constant 17 : i32
    %51 = vector.broadcast %c17_i32 : i32 to vector<20x128xi32>
    %52 = arith.cmpi sle, %48, %51 : vector<20x128xi32>
    %53 = arith.andi %50, %52 : vector<20x128xi1>
    %cst_39 = arith.constant 0.000000e+00 : f32
    %54 = vector.broadcast %cst_39 : f32 to vector<20x128xf32>
    %55 = arith.select %53, %47, %54 : vector<20x128xi1>, vector<20x128xf32>
    %c0_40 = arith.constant 0 : index
    %c0_41 = arith.constant 0 : index
    %56 = vector.load %arg15[%c0_40, %c0_41] : memref<1x64xf32, #tpu.memory_space<vmem>>, vector<1x64xf32>
    %57 = vector.broadcast %56 : vector<1x64xf32> to vector<20x64xf32>
    %58 = arith.mulf %7, %57 : vector<20x64xf32>
    %c0_42 = arith.constant 0 : index
    %c0_43 = arith.constant 0 : index
    %59 = vector.load %arg16[%c0_42, %c0_43] : memref<1x64xf32, #tpu.memory_space<vmem>>, vector<1x64xf32>
    %60 = vector.broadcast %59 : vector<1x64xf32> to vector<20x64xf32>
    %61 = arith.addf %58, %60 : vector<20x64xf32>
    %cst_44 = arith.constant 0.000000e+00 : f32
    %62 = vector.broadcast %cst_44 : f32 to vector<20x64xf32>
    %63 = arith.maximumf %61, %62 : vector<20x64xf32>
    %64 = tpu.iota {dimensions = array<i32: 0>} : vector<20x64xi32>
    %c2_i32_45 = arith.constant 2 : i32
    %65 = vector.broadcast %c2_i32_45 : i32 to vector<20x64xi32>
    %66 = arith.cmpi sge, %64, %65 : vector<20x64xi32>
    %c17_i32_46 = arith.constant 17 : i32
    %67 = vector.broadcast %c17_i32_46 : i32 to vector<20x64xi32>
    %68 = arith.cmpi sle, %64, %67 : vector<20x64xi32>
    %69 = arith.andi %66, %68 : vector<20x64xi1>
    %cst_47 = arith.constant 0.000000e+00 : f32
    %70 = vector.broadcast %cst_47 : f32 to vector<20x64xf32>
    %71 = arith.select %69, %63, %70 : vector<20x64xi1>, vector<20x64xf32>
    %72 = vector.extract_strided_slice %55 {offsets = [0, 0], sizes = [18, 128], strides = [1, 1]} : vector<20x128xf32> to vector<18x128xf32>
    %c0_48 = arith.constant 0 : index
    %c0_49 = arith.constant 0 : index
    %c0_50 = arith.constant 0 : index
    %73 = vector.load %arg8[%c0_48, %c0_49, %c0_50] : memref<3x128x64xf32, #tpu.memory_space<vmem>>, vector<1x128x64xf32>
    %74 = vector.shape_cast %73 : vector<1x128x64xf32> to vector<128x64xf32>
    %cst_51 = arith.constant dense<0.000000e+00> : vector<18x64xf32>
    %75 = tpu.matmul %72, %74, %cst_51 {dimension_numbers = #tpu.dot_dimension_numbers<[1], [0], [0], [1], [0, 0, 1, 1], [], []>} : vector<18x128xf32>, vector<128x64xf32>, vector<18x64xf32> -> vector<18x64xf32>
    %76 = vector.extract_strided_slice %55 {offsets = [1, 0], sizes = [18, 128], strides = [1, 1]} : vector<20x128xf32> to vector<18x128xf32>
    %c1_52 = arith.constant 1 : index
    %c0_53 = arith.constant 0 : index
    %c0_54 = arith.constant 0 : index
    %77 = vector.load %arg8[%c1_52, %c0_53, %c0_54] : memref<3x128x64xf32, #tpu.memory_space<vmem>>, vector<1x128x64xf32>
    %78 = vector.shape_cast %77 : vector<1x128x64xf32> to vector<128x64xf32>
    %cst_55 = arith.constant dense<0.000000e+00> : vector<18x64xf32>
    %79 = tpu.matmul %76, %78, %cst_55 {dimension_numbers = #tpu.dot_dimension_numbers<[1], [0], [0], [1], [0, 0, 1, 1], [], []>} : vector<18x128xf32>, vector<128x64xf32>, vector<18x64xf32> -> vector<18x64xf32>
    %80 = arith.addf %75, %79 : vector<18x64xf32>
    %81 = vector.extract_strided_slice %55 {offsets = [2, 0], sizes = [18, 128], strides = [1, 1]} : vector<20x128xf32> to vector<18x128xf32>
    %c2_56 = arith.constant 2 : index
    %c0_57 = arith.constant 0 : index
    %c0_58 = arith.constant 0 : index
    %82 = vector.load %arg8[%c2_56, %c0_57, %c0_58] : memref<3x128x64xf32, #tpu.memory_space<vmem>>, vector<1x128x64xf32>
    %83 = vector.shape_cast %82 : vector<1x128x64xf32> to vector<128x64xf32>
    %cst_59 = arith.constant dense<0.000000e+00> : vector<18x64xf32>
    %84 = tpu.matmul %81, %83, %cst_59 {dimension_numbers = #tpu.dot_dimension_numbers<[1], [0], [0], [1], [0, 0, 1, 1], [], []>} : vector<18x128xf32>, vector<128x64xf32>, vector<18x64xf32> -> vector<18x64xf32>
    %85 = arith.addf %80, %84 : vector<18x64xf32>
    %86 = vector.extract_strided_slice %71 {offsets = [0, 0], sizes = [18, 64], strides = [1, 1]} : vector<20x64xf32> to vector<18x64xf32>
    %c0_60 = arith.constant 0 : index
    %c0_61 = arith.constant 0 : index
    %c0_62 = arith.constant 0 : index
    %87 = vector.load %arg9[%c0_60, %c0_61, %c0_62] : memref<3x64x64xf32, #tpu.memory_space<vmem>>, vector<1x64x64xf32>
    %88 = vector.shape_cast %87 : vector<1x64x64xf32> to vector<64x64xf32>
    %cst_63 = arith.constant dense<0.000000e+00> : vector<18x64xf32>
    %89 = tpu.matmul %86, %88, %cst_63 {dimension_numbers = #tpu.dot_dimension_numbers<[1], [0], [0], [1], [0, 0, 1, 1], [], []>} : vector<18x64xf32>, vector<64x64xf32>, vector<18x64xf32> -> vector<18x64xf32>
    %90 = vector.extract_strided_slice %71 {offsets = [1, 0], sizes = [18, 64], strides = [1, 1]} : vector<20x64xf32> to vector<18x64xf32>
    %c1_64 = arith.constant 1 : index
    %c0_65 = arith.constant 0 : index
    %c0_66 = arith.constant 0 : index
    %91 = vector.load %arg9[%c1_64, %c0_65, %c0_66] : memref<3x64x64xf32, #tpu.memory_space<vmem>>, vector<1x64x64xf32>
    %92 = vector.shape_cast %91 : vector<1x64x64xf32> to vector<64x64xf32>
    %cst_67 = arith.constant dense<0.000000e+00> : vector<18x64xf32>
    %93 = tpu.matmul %90, %92, %cst_67 {dimension_numbers = #tpu.dot_dimension_numbers<[1], [0], [0], [1], [0, 0, 1, 1], [], []>} : vector<18x64xf32>, vector<64x64xf32>, vector<18x64xf32> -> vector<18x64xf32>
    %94 = arith.addf %89, %93 : vector<18x64xf32>
    %95 = vector.extract_strided_slice %71 {offsets = [2, 0], sizes = [18, 64], strides = [1, 1]} : vector<20x64xf32> to vector<18x64xf32>
    %c2_68 = arith.constant 2 : index
    %c0_69 = arith.constant 0 : index
    %c0_70 = arith.constant 0 : index
    %96 = vector.load %arg9[%c2_68, %c0_69, %c0_70] : memref<3x64x64xf32, #tpu.memory_space<vmem>>, vector<1x64x64xf32>
    %97 = vector.shape_cast %96 : vector<1x64x64xf32> to vector<64x64xf32>
    %cst_71 = arith.constant dense<0.000000e+00> : vector<18x64xf32>
    %98 = tpu.matmul %95, %97, %cst_71 {dimension_numbers = #tpu.dot_dimension_numbers<[1], [0], [0], [1], [0, 0, 1, 1], [], []>} : vector<18x64xf32>, vector<64x64xf32>, vector<18x64xf32> -> vector<18x64xf32>
    %99 = arith.addf %94, %98 : vector<18x64xf32>
    %100 = arith.addf %85, %99 : vector<18x64xf32>
    %c0_72 = arith.constant 0 : index
    %c0_73 = arith.constant 0 : index
    %101 = vector.load %arg10[%c0_72, %c0_73] : memref<1x64xf32, #tpu.memory_space<vmem>>, vector<1x64xf32>
    %102 = vector.broadcast %101 : vector<1x64xf32> to vector<18x64xf32>
    %103 = arith.addf %100, %102 : vector<18x64xf32>
    %c0_74 = arith.constant 0 : index
    %c0_75 = arith.constant 0 : index
    %104 = vector.load %arg17[%c0_74, %c0_75] : memref<1x64xf32, #tpu.memory_space<vmem>>, vector<1x64xf32>
    %105 = vector.broadcast %104 : vector<1x64xf32> to vector<18x64xf32>
    %106 = arith.mulf %103, %105 : vector<18x64xf32>
    %c0_76 = arith.constant 0 : index
    %c0_77 = arith.constant 0 : index
    %107 = vector.load %arg18[%c0_76, %c0_77] : memref<1x64xf32, #tpu.memory_space<vmem>>, vector<1x64xf32>
    %108 = vector.broadcast %107 : vector<1x64xf32> to vector<18x64xf32>
    %109 = arith.addf %106, %108 : vector<18x64xf32>
    %cst_78 = arith.constant 0.000000e+00 : f32
    %110 = vector.broadcast %cst_78 : f32 to vector<18x64xf32>
    %111 = arith.maximumf %109, %110 : vector<18x64xf32>
    %112 = tpu.iota {dimensions = array<i32: 0>} : vector<18x64xi32>
    %c1_i32 = arith.constant 1 : i32
    %113 = vector.broadcast %c1_i32 : i32 to vector<18x64xi32>
    %114 = arith.cmpi sge, %112, %113 : vector<18x64xi32>
    %c16_i32 = arith.constant 16 : i32
    %115 = vector.broadcast %c16_i32 : i32 to vector<18x64xi32>
    %116 = arith.cmpi sle, %112, %115 : vector<18x64xi32>
    %117 = arith.andi %114, %116 : vector<18x64xi1>
    %cst_79 = arith.constant 0.000000e+00 : f32
    %118 = vector.broadcast %cst_79 : f32 to vector<18x64xf32>
    %119 = arith.select %117, %111, %118 : vector<18x64xi1>, vector<18x64xf32>
    %120 = vector.extract_strided_slice %119 {offsets = [0, 0], sizes = [16, 64], strides = [1, 1]} : vector<18x64xf32> to vector<16x64xf32>
    %c0_80 = arith.constant 0 : index
    %c0_81 = arith.constant 0 : index
    %c0_82 = arith.constant 0 : index
    %121 = vector.load %arg11[%c0_80, %c0_81, %c0_82] : memref<3x64x64xf32, #tpu.memory_space<vmem>>, vector<1x64x64xf32>
    %122 = vector.shape_cast %121 : vector<1x64x64xf32> to vector<64x64xf32>
    %cst_83 = arith.constant dense<0.000000e+00> : vector<16x64xf32>
    %123 = tpu.matmul %120, %122, %cst_83 {dimension_numbers = #tpu.dot_dimension_numbers<[1], [0], [0], [1], [0, 0, 1, 1], [], []>} : vector<16x64xf32>, vector<64x64xf32>, vector<16x64xf32> -> vector<16x64xf32>
    %124 = vector.extract_strided_slice %119 {offsets = [1, 0], sizes = [16, 64], strides = [1, 1]} : vector<18x64xf32> to vector<16x64xf32>
    %c1_84 = arith.constant 1 : index
    %c0_85 = arith.constant 0 : index
    %c0_86 = arith.constant 0 : index
    %125 = vector.load %arg11[%c1_84, %c0_85, %c0_86] : memref<3x64x64xf32, #tpu.memory_space<vmem>>, vector<1x64x64xf32>
    %126 = vector.shape_cast %125 : vector<1x64x64xf32> to vector<64x64xf32>
    %cst_87 = arith.constant dense<0.000000e+00> : vector<16x64xf32>
    %127 = tpu.matmul %124, %126, %cst_87 {dimension_numbers = #tpu.dot_dimension_numbers<[1], [0], [0], [1], [0, 0, 1, 1], [], []>} : vector<16x64xf32>, vector<64x64xf32>, vector<16x64xf32> -> vector<16x64xf32>
    %128 = arith.addf %123, %127 : vector<16x64xf32>
    %129 = vector.extract_strided_slice %119 {offsets = [2, 0], sizes = [16, 64], strides = [1, 1]} : vector<18x64xf32> to vector<16x64xf32>
    %c2_88 = arith.constant 2 : index
    %c0_89 = arith.constant 0 : index
    %c0_90 = arith.constant 0 : index
    %130 = vector.load %arg11[%c2_88, %c0_89, %c0_90] : memref<3x64x64xf32, #tpu.memory_space<vmem>>, vector<1x64x64xf32>
    %131 = vector.shape_cast %130 : vector<1x64x64xf32> to vector<64x64xf32>
    %cst_91 = arith.constant dense<0.000000e+00> : vector<16x64xf32>
    %132 = tpu.matmul %129, %131, %cst_91 {dimension_numbers = #tpu.dot_dimension_numbers<[1], [0], [0], [1], [0, 0, 1, 1], [], []>} : vector<16x64xf32>, vector<64x64xf32>, vector<16x64xf32> -> vector<16x64xf32>
    %133 = arith.addf %128, %132 : vector<16x64xf32>
    %c0_92 = arith.constant 0 : index
    %c0_93 = arith.constant 0 : index
    %134 = vector.load %arg12[%c0_92, %c0_93] : memref<1x64xf32, #tpu.memory_space<vmem>>, vector<1x64xf32>
    %135 = vector.broadcast %134 : vector<1x64xf32> to vector<16x64xf32>
    %136 = arith.addf %133, %135 : vector<16x64xf32>
    %137 = arith.addf %136, %39 : vector<16x64xf32>
    %c0_94 = arith.constant 0 : index
    %c0_95 = arith.constant 0 : index
    %c0_96 = arith.constant 0 : index
    %138 = vector.load %arg19[%c0_94, %c0_95, %c0_96] : memref<1x16x64xf32, #tpu.memory_space<vmem>>, vector<1x16x64xf32>
    %139 = vector.shape_cast %138 : vector<1x16x64xf32> to vector<16x64xf32>
    %140 = vector.shape_cast %137 : vector<16x64xf32> to vector<1x16x64xf32>
    tpu.vector_store %arg19[%c0_94, %c0_95, %c0_96], %140 {strides = array<i32>} : memref<1x16x64xf32, #tpu.memory_space<vmem>>, vector<1x16x64xf32>,
    return
  }
  func.func @transform_0(%arg0: i32) -> (i32, i32, i32) {
    %c0_i32 = arith.constant 0 : i32
    %c0_i32_0 = arith.constant 0 : i32
    %c0_i32_1 = arith.constant 0 : i32
    return %arg0, %c0_i32, %c0_i32_0 : i32, i32, i32
  }
  func.func @transform_1(%arg0: i32) -> (i32, i32, i32) {
    %c0_i32 = arith.constant 0 : i32
    %c0_i32_0 = arith.constant 0 : i32
    %c0_i32_1 = arith.constant 0 : i32
    return %arg0, %c0_i32, %c0_i32_0 : i32, i32, i32
  }
  func.func @transform_2(%arg0: i32) -> (i32, i32) {
    %c0_i32 = arith.constant 0 : i32
    %c0_i32_0 = arith.constant 0 : i32
    %c0_i32_1 = arith.constant 0 : i32
    return %c0_i32, %c0_i32_0 : i32, i32
  }
  func.func @transform_3(%arg0: i32) -> (i32, i32) {
    %c0_i32 = arith.constant 0 : i32
    %c0_i32_0 = arith.constant 0 : i32
    %c0_i32_1 = arith.constant 0 : i32
    return %c0_i32, %c0_i32_0 : i32, i32
  }
  func.func @transform_4(%arg0: i32) -> (i32, i32, i32) {
    %c0_i32 = arith.constant 0 : i32
    %c0_i32_0 = arith.constant 0 : i32
    %c0_i32_1 = arith.constant 0 : i32
    %c0_i32_2 = arith.constant 0 : i32
    return %c0_i32, %c0_i32_0, %c0_i32_1 : i32, i32, i32
  }
  func.func @transform_5(%arg0: i32) -> (i32, i32, i32) {
    %c0_i32 = arith.constant 0 : i32
    %c0_i32_0 = arith.constant 0 : i32
    %c0_i32_1 = arith.constant 0 : i32
    %c0_i32_2 = arith.constant 0 : i32
    return %c0_i32, %c0_i32_0, %c0_i32_1 : i32, i32, i32
  }
  func.func @transform_6(%arg0: i32) -> (i32, i32) {
    %c0_i32 = arith.constant 0 : i32
    %c0_i32_0 = arith.constant 0 : i32
    %c0_i32_1 = arith.constant 0 : i32
    return %c0_i32, %c0_i32_0 : i32, i32
  }
  func.func @transform_7(%arg0: i32) -> (i32, i32, i32) {
    %c0_i32 = arith.constant 0 : i32
    %c0_i32_0 = arith.constant 0 : i32
    %c0_i32_1 = arith.constant 0 : i32
    %c0_i32_2 = arith.constant 0 : i32
    return %c0_i32, %c0_i32_0, %c0_i32_1 : i32, i32, i32
  }
  func.func @transform_8(%arg0: i32) -> (i32, i32, i32) {
    %c0_i32 = arith.constant 0 : i32
    %c0_i32_0 = arith.constant 0 : i32
    %c0_i32_1 = arith.constant 0 : i32
    %c0_i32_2 = arith.constant 0 : i32
    return %c0_i32, %c0_i32_0, %c0_i32_1 : i32, i32, i32
  }
  func.func @transform_9(%arg0: i32) -> (i32, i32) {
    %c0_i32 = arith.constant 0 : i32
    %c0_i32_0 = arith.constant 0 : i32
    %c0_i32_1 = arith.constant 0 : i32
    return %c0_i32, %c0_i32_0 : i32, i32
  }
  func.func @transform_10(%arg0: i32) -> (i32, i32, i32) {
    %c0_i32 = arith.constant 0 : i32
    %c0_i32_0 = arith.constant 0 : i32
    %c0_i32_1 = arith.constant 0 : i32
    %c0_i32_2 = arith.constant 0 : i32
    return %c0_i32, %c0_i32_0, %c0_i32_1 : i32, i32, i32
  }
  func.func @transform_11(%arg0: i32) -> (i32, i32) {
    %c0_i32 = arith.constant 0 : i32
    %c0_i32_0 = arith.constant 0 : i32
    %c0_i32_1 = arith.constant 0 : i32
    return %c0_i32, %c0_i32_0 : i32, i32
  }
  func.func @transform_12(%arg0: i32) -> (i32, i32) {
    %c0_i32 = arith.constant 0 : i32
    %c0_i32_0 = arith.constant 0 : i32
    %c0_i32_1 = arith.constant 0 : i32
    return %c0_i32, %c0_i32_0 : i32, i32
  }
  func.func @transform_13(%arg0: i32) -> (i32, i32) {
    %c0_i32 = arith.constant 0 : i32
    %c0_i32_0 = arith.constant 0 : i32
    %c0_i32_1 = arith.constant 0 : i32
    return %c0_i32, %c0_i32_0 : i32, i32
  }
  func.func @transform_14(%arg0: i32) -> (i32, i32) {
    %c0_i32 = arith.constant 0 : i32
    %c0_i32_0 = arith.constant 0 : i32
    %c0_i32_1 = arith.constant 0 : i32
    return %c0_i32, %c0_i32_0 : i32, i32
  }
  func.func @transform_15(%arg0: i32) -> (i32, i32) {
    %c0_i32 = arith.constant 0 : i32
    %c0_i32_0 = arith.constant 0 : i32
    %c0_i32_1 = arith.constant 0 : i32
    return %c0_i32, %c0_i32_0 : i32, i32
  }
  func.func @transform_16(%arg0: i32) -> (i32, i32) {
    %c0_i32 = arith.constant 0 : i32
    %c0_i32_0 = arith.constant 0 : i32
    %c0_i32_1 = arith.constant 0 : i32
    return %c0_i32, %c0_i32_0 : i32, i32
  }
  func.func @transform_17(%arg0: i32) -> (i32, i32) {
    %c0_i32 = arith.constant 0 : i32
    %c0_i32_0 = arith.constant 0 : i32
    %c0_i32_1 = arith.constant 0 : i32
    return %c0_i32, %c0_i32_0 : i32, i32
  }
  func.func @transform_18(%arg0: i32) -> (i32, i32, i32) {
    %c0_i32 = arith.constant 0 : i32
    %c0_i32_0 = arith.constant 0 : i32
    %c0_i32_1 = arith.constant 0 : i32
    return %arg0, %c0_i32, %c0_i32_0 : i32, i32, i32
  }
}

</mosaic_0001>

<bundles_post_ra>
// kernel: tpu_custom_call.1
= control target key start
LH: loop header
LB: loop body
LE: loop exit
PB: predicated region body
PF: predicated region fallthrough
CT: control target
= control target key end

     0   :  { %s4507_s0 = inlined_call_operand.vmem [shape: f32[2,8,64], index: 0, kind: input, shape index: {}]   ;;  %s4508_s1 = inlined_call_operand.vmem [shape: f32[2,20,64], index: 1, kind: input, shape index: {}]   ;;  %s4509_s2 = inlined_call_operand.vmem [shape: f32[20,8], index: 2, kind: input, shape index: {}]   ;;  %s4510_s3 = inlined_call_operand.vmem [shape: f32[64,128], index: 3, kind: input, shape index: {}]   ;;  %s4511_s4 = inlined_call_operand.vmem [shape: f32[3,128,64], index: 4, kind: input, shape index: {}]   ;;  %s4512_s5 = inlined_call_operand.vmem [shape: f32[3,64,64], index: 5, kind: input, shape index: {}]   ;;  %s4513_s6 = inlined_call_operand.vmem [shape: f32[1,64], index: 6, kind: input, shape index: {}]   ;;  %s4514_s7 = inlined_call_operand.vmem [shape: f32[3,128,64], index: 7, kind: input, shape index: {}]   ;;  %s4515_s8 = inlined_call_operand.vmem [shape: f32[3,64,64], index: 8, kind: input, shape index: {}]   ;;  %s4516_s9 = inlined_call_operand.vmem [shape: f32[1,64], index: 9, kind: input, shape index: {}]   ;;  %s4517_s10 = inlined_call_operand.vmem [shape: f32[3,64,64], index: 10, kind: input, shape index: {}]   ;;  %s4518_s11 = inlined_call_operand.vmem [shape: f32[1,64], index: 11, kind: input, shape index: {}]   ;;  %s4519_s12 = inlined_call_operand.vmem [shape: f32[1,128], index: 12, kind: input, shape index: {}]   ;;  %s4520_s13 = inlined_call_operand.vmem [shape: f32[1,128], index: 13, kind: input, shape index: {}]   ;;  %s4521_s14 = inlined_call_operand.vmem [shape: f32[1,64], index: 14, kind: input, shape index: {}]   ;;  %s4522_s15 = inlined_call_operand.vmem [shape: f32[1,64], index: 15, kind: input, shape index: {}]   ;;  %s4523_s16 = inlined_call_operand.vmem [shape: f32[1,64], index: 16, kind: input, shape index: {}]   ;;  %s4524_s17 = inlined_call_operand.vmem [shape: f32[1,64], index: 17, kind: input, shape index: {}]   ;;  %s4525_s18 = inlined_call_operand.hbm [shape: f32[2,16,64], index: 18, kind: output, shape index: {}]  }
   0x1   :  { %4534 = sst [smem:[#allocation11_spill]] %s4507_s0 }
   0x2   :  { %4535 = sst [smem:[#allocation12_spill]] %s4508_s1 }
   0x3   :  { %4536 = sst [smem:[#allocation13_spill]] %s4509_s2 }
   0x4   :  { %4537 = sst [smem:[#allocation14_spill]] %s4510_s3 }
   0x5   :  { %4538 = sst [smem:[#allocation15_spill]] %s4525_s18 }
   0x6   :  { %23 = vsyncpa [#allocation3], 0 }
   0x7   :  { %25 = vsyncpa [#allocation3 + $0x1], 0  ;;  %s3529_s27 = smov 0   ;;  %s3531_s28 = smov 0  }
   0x8   :  { %s3533_s29 = smov 0   ;;  %s3535_s30 = smov 0  }
   0x9 LB: > { %4539 = sst [smem:[#allocation5_spill]] %s3415_s27  ;;  %s3550_s0 = sadd.s32 4294967295, %s3427_s30   ;;  %s3427_s30 = sphi %s3535_s30, %s4556_s30   ;;  %s3423_s29 = sphi %s3533_s29, %s4558_s29   ;;  %s3419_s28 = sphi %s3531_s28, %s4560_s28   ;;  %s3415_s27 = sphi %s3529_s27, %s4559_s27  }
   0xa   : > { %4540 = sst [smem:[#allocation6_spill]] %s3423_s29  ;;  %s2488_s19 = sadd.s32 4294967294, %s3427_s30  }
   0xb   : > { %4541 = sst [smem:[#allocation7_spill]] %s3427_s30  ;;  %s3554_s1 = sadd.s32 1, %s3427_s30  }
   0xc   : > { %4542 = sst [smem:[#allocation8_spill]] %s3554_s1  ;;  %s426_s20 = sadd.s32 1, %s3423_s29 }
   0xd   : > { %s423_s21 = ssub.s32 %s3427_s30, %s3554_s1  ;;  %p436_p0 = scmp.ne.s32.totalorder %s3423_s29, %s3419_s28 }
   0xe   : > { %p424_p1 = scmp.eq.s32.totalorder %s423_s21, 0  ;;  %p437_p2 = scmp.eq.s32.totalorder %s3550_s0, 1 }
   0xf   : > { %p442_p3 = scmp.ne.s32.totalorder %s3419_s28, %s3415_s27  ;;  %p443_p4 = scmp.eq.s32.totalorder %s2488_s19, 1 }
  0x10   : > { %s3565_s22 = scalar_select %p424_p1, %s3423_s29, %s426_s20  }
  0x11   : > { %p3567_p5 = por %p437_p2, %p436_p0  ;;  %p3571_p6 = por %p443_p4, %p442_p3 }
  0x12   : > { %4543 = sst [smem:[#allocation9_spill]] %s3565_s22  ;;  %p2491_p7 = scmp.ge.s32.totalorder %s3427_s30, 1 }
  0x13   : > { %s4545_s23 = scalar_select %p3571_p6, 1, 0 }
  0x14   : > { %p524_p8 = scmp.lt.s32.totalorder %s3427_s30, 3 }
  0x15   : > { %4546 = sst [smem:[#allocation10_spill]] %s4545_s23 }
  0x16   : > { %p525_p9 = pnand %p2491_p7, %p524_p8 }
  0x17   : > { %p582_p10 = scmp.lt.s32.totalorder (!%p525_p9), %s3550_s0, 1  ;;  %s4547_s3 = sld [smem:[#allocation14_spill]] (!%p525_p9) }
  0x18   : > { %528 = sbr.rel (%p525_p9) target bundleno = 1011 (0x3f3), region = 92  ;;  %s4548_s27 = sld [smem:[#allocation11_spill]] (!%p525_p9) }
  0x19   : > { %s4549_s18 = sld [smem:[#allocation13_spill]] (!%p525_p9)  ;;  %s579_s1 = sand.u32 (!%p525_p9), 1, %s3419_s28  }
  0x1a   : > { %s4550_s26 = sld [smem:[#allocation12_spill]] (!%p525_p9) }
  0x1b   : > { %s4551_s30 = sld [smem:[#allocation15_spill]] (!%p525_p9) }
  0x1d   : > { %v3429_v0 = vmov 0.0   ;;  %s3581_s24 = scalar_select %p582_p10, %s3550_s0, 1  ;;  %vm3430_vm0 = vmmov 0   ;;  %v692_v1 = vld [vmem:[%s4547_s3 + $0x38] sm:$0xff]  ;;  %v691_v2 = vld [vmem:[%s4547_s3 + $0x30] sm:$0xff]  ;;  %v690_v3 = vld [vmem:[%s4547_s3 + $0x28] sm:$0xff]  ;;  %v1407_v54 = vlaneseq }
  0x1e   : > { %2870 = vmatprep.subr.mxu0 %v3429_v0  ;;  %2881 = vmatprep.subr.mxu1 %v3429_v0  ;;  %vm595_vm1 = vcmask 64512   ;;  %v689_v6 = vld [vmem:[%s4547_s3 + $0x20] sm:$0xff]  ;;  %v688_v7 = vld [vmem:[%s4547_s3 + $0x18] sm:$0xff]  ;;  %v687_v9 = vld [vmem:[%s4547_s3 + $0x10] sm:$0xff]  ;;  %vm693_vm2 = vcmask 523264   ;;  %vm822_vm3 = vcmask 1045504  }
  0x1f   : > { %2872 = vmatprep.mubr.msk.f32.mxu0 %vm3430_vm0, %v3429_v0  ;;  %2897 = vmatprep.mubr.msk.f32.mxu1 %vm3430_vm0, %v3429_v0  ;;  %s2493_s21 = sshll.u32 %s3581_s24, 3  ;;  %v592_v4 = vld [vmem:[%s4549_s18] sm:$0xff]  ;;  %v593_v8 = vld [vmem:[%s4549_s18 + $0x8] sm:$0xff]  ;;  %v594_v11 = vld [vmem:[%s4549_s18 + $0x10] sm:$0xf]  ;;  %v3753_v59 = vshrl.u32 %v1407_v54, 7 }
  0x20   : > { %2882 = vmatpush3.msra.mxu1 %v692_v1  ;;  %s585_s25 = scalar_lea.vmem %s4548_s27, %s2493_s21  ;;  %v686_v10 = vld [vmem:[%s4547_s3 + $0x8] sm:$0xff]  ;;  %v685_v12 = vld [vmem:[%s4547_s3] sm:$0xff]  ;;  %v2516_v13 = vld [vmem:[%s4511_s4 + $0xf8] sm:$0xff]  ;;  %vm905_vm4 = vcmask 1046528   ;;  %vm1005_vm6 = vcmask 1044480   ;;  %s3323_s19 = smul.u32 24, %s3581_s24 }
  0x21   : > { %2883 = vmatprep.subr.mxu1 %v3429_v0  ;;  %v591_v5 = vld [vmem:[%s585_s25] sm:$0xff]  ;;  %v801_v14 = vld [vmem:[%s4511_s4 + $0x78] sm:$0xff]  ;;  %v2515_v15 = vld [vmem:[%s4511_s4 + $0xf0] sm:$0xff]  ;;  %vm1411_vm5 = vcmp.ge.s32.totalorder %v3753_v59, 2  ;;  %vm2097_vm8 = vcmp.ge.s32.totalorder %v3753_v59, 1  ;;  %s4552_s22 = smov %s4551_s30  ;;  %s3431_s21 = smov [#allocation2]  }
  0x22   : > { %2884 = vmatpush3.msra.mxu1 %v691_v2  ;;  %2871 = vmatpush3.msra.mxu0 %v591_v5  ;;  %v2514_v16 = vld [vmem:[%s4511_s4 + $0xe8] sm:$0xff]  ;;  %v2513_v17 = vld [vmem:[%s4511_s4 + $0xe0] sm:$0xff]  ;;  %v2512_v18 = vld [vmem:[%s4511_s4 + $0xd8] sm:$0xff]  ;;  %s590_s20 = scalar_lea.vmem %s4550_s26, %s3323_s19  ;;  %s2492_s19 = sshll.u32 %s579_s1, 4 }
  0x23   : > { %2885 = vmatprep.subr.mxu1 %v3429_v0  ;;  %2873 = vmatmul.mubr.msk.f32.vlgmr.msra.gmra.mxu0 %vm595_vm1, %v592_v4  ;;  %v2511_v19 = vld [vmem:[%s4511_s4 + $0xd0] sm:$0xff]  ;;  %v2510_v20 = vld [vmem:[%s4511_s4 + $0xc8] sm:$0xff]  ;;  %v2509_v21 = vld [vmem:[%s4511_s4 + $0xc0] sm:$0xff]  ;;  %s2650_s26 = sshll.u32 %s3550_s0, 8  ;;  %s581_s27 = scalar_lea.vmem [#allocation2], %s2492_s19 }
  0x24   : > { %2886 = vmatpush3.msra.mxu1 %v690_v3  ;;  %2875 = vmatprep.mubr.msk.f32.mxu0 %vm3430_vm0, %v3429_v0  ;;  %v2508_v22 = vld [vmem:[%s4511_s4 + $0xb8] sm:$0xff]  ;;  %v2507_v23 = vld [vmem:[%s4511_s4 + $0xb0] sm:$0xff]  ;;  %v2506_v24 = vld [vmem:[%s4511_s4 + $0xa8] sm:$0xff]  ;;  %s2414_s24 = sshll.u32 %s581_s27, 4  ;;  %s4461_s23 = scalar_lea.hbm %s4551_s30, %s2650_s26  ;;  %s4463_s24 = int_to_ptr.vmem [resolvable:$true] %s2414_s24 }
  0x25   : > { %2887 = vmatprep.subr.mxu1 %v3429_v0  ;;  %2906 = vmatprep.subr.mxu0 %v2516_v13  ;;  %v800_v26 = vld [vmem:[%s4511_s4 + $0x70] sm:$0xff]  ;;  %v799_v28 = vld [vmem:[%s4511_s4 + $0x68] sm:$0xff]  ;;  %v798_v30 = vld [vmem:[%s4511_s4 + $0x60] sm:$0xff]  ;;  %s4467_s0 = scalar_lea.sflag [#allocation3], %s579_s1  ;;  %s3367_s19 = scalar_lea.vmem %s4463_s24, 256 }
  0x26   : > { %2888 = vmatpush3.msra.mxu1 %v689_v6  ;;  %2907 = vmatpush3.msra.mxu0 %v2516_v13  ;;  %v797_v32 = vld [vmem:[%s4511_s4 + $0x58] sm:$0xff]  ;;  %v796_v34 = vld [vmem:[%s4511_s4 + $0x50] sm:$0xff]  ;;  %v795_v36 = vld [vmem:[%s4511_s4 + $0x48] sm:$0xff]  ;;  %v3765_v6 = vadd.s32 16, %v3753_v59  ;;  %p3368_p11 = scmp.ne.s32.totalorder %s4463_s24, %s3367_s19  ;;  %s3371_s25 = sshll.u32 %s3431_s21, 4  ;;  %s3372_s25 = int_to_ptr.vmem [resolvable:$false] %s3371_s25 }
  0x27   : > { %2889 = vmatprep.subr.mxu1 %v3429_v0  ;;  %2876 = vmatmul.mubr.msk.f32.gmra.mxu0 %vm595_vm1, %v593_v8  ;;  %v794_v37 = vld [vmem:[%s4511_s4 + $0x40] sm:$0xff]  ;;  %v793_v38 = vld [vmem:[%s4511_s4 + $0x38] sm:$0xff]  ;;  %v792_v39 = vld [vmem:[%s4511_s4 + $0x30] sm:$0xff]  ;;  %s3373_s26 = scalar_lea.vmem %s3372_s25, 512  ;;  %p3374_p0 = scmp.lt.s32.totalorder %s4463_s24, %s3372_s25 }
  0x28   : > { %2890 = vmatpush3.msra.mxu1 %v688_v7  ;;  %2878 = vmatprep.mubr.msk.f32.mxu0 %vm3430_vm0, %v3429_v0  ;;  %v791_v40 = vld [vmem:[%s4511_s4 + $0x28] sm:$0xff]  ;;  %v2505_v41 = vld [vmem:[%s4511_s4 + $0xa0] sm:$0xff]  ;;  %v2504_v43 = vld [vmem:[%s4511_s4 + $0x98] sm:$0xff]  ;;  %vm1416_vm7 = vcmp.le.s32.totalorder %v3765_v6, 17  ;;  %vm2102_vm9 = vcmp.le.s32.totalorder %v3765_v6, 16  ;;  %p3369_p12 = pnand %p3368_p11, %p3567_p5  ;;  %p3375_p1 = scmp.lt.s32.totalorder %s3373_s26, %s3367_s19 }
  0x29   : > { %2891 = vmatprep.subr.mxu1 %v3429_v0  ;;  %2908 = vmatprep.subr.mxu0 %v2515_v15  ;;  %v790_v42 = vld [vmem:[%s4511_s4 + $0x20] sm:$0xff]  ;;  %v789_v44 = vld [vmem:[%s4511_s4 + $0x18] sm:$0xff]  ;;  %v2503_v45 = vld [vmem:[%s4511_s4 + $0x90] sm:$0xff] }
  0x2a   : > { %2892 = vmatpush3.msra.mxu1 %v687_v9  ;;  %2909 = vmatpush3.msra.mxu0 %v2515_v15  ;;  %v788_v46 = vld [vmem:[%s4511_s4 + $0x10] sm:$0xff]  ;;  %v2502_v47 = vld [vmem:[%s4511_s4 + $0x88] sm:$0xff]  ;;  %v2501_v49 = vld [vmem:[%s4511_s4 + $0x80] sm:$0xff]  ;;  %p3370_p13 = pneg %p3369_p12  ;;  %p3376_p2 = por %p3375_p1, %p3374_p0 }
  0x2b   : > { %2893 = vmatprep.subr.mxu1 %v3429_v0  ;;  %2879 = vmatmul.mubr.msk.f32.gmra.mxu0 %vm595_vm1, %v594_v11  ;;  %v787_v48 = vld [vmem:[%s4511_s4 + $0x8] sm:$0xff]  ;;  %v786_v50 = vld [vmem:[%s4511_s4] sm:$0xff]  ;;  %v2532_v51 = vld [vmem:[%s4511_s4 + $0x178] sm:$0xff] }
  0x2c   : > { %2894 = vmatpush3.msra.mxu1 %v686_v10  ;;  %2910 = vmatprep.subr.mxu0 %v2514_v16  ;;  %v2540_v52 = vld [vmem:[%s4512_s5 + $0x78] sm:$0xff]  ;;  %v2556_v53 = vld [vmem:[%s4519_s12] ss:$0 sm:$0xff]  ;;  %v2639_v6 = vld [vmem:[%s4517_s10 + $0xa8] sm:$0xff]  ;;  %p3377_p3 = pnand %p3376_p2, %p3370_p13 }
  0x2d   : > { %2895 = vmatprep.subr.mxu1 %v3429_v0  ;;  %2911 = vmatpush3.msra.mxu0 %v2514_v16  ;;  %v2557_v56 = vld [vmem:[%s4520_s13] ss:$0 sm:$0xff] }
  0x2e   : > { %2896 = vmatpush3.msra.mxu1 %v685_v12  ;;  %2912 = vmatprep.subr.mxu0 %v2513_v17  ;;  %v2533_v54 = vld [vmem:[%s4512_s5 + $0x40] sm:$0xff] }
  0x2f   : > { %2941 = vmatprep.subr.mxu1 %v801_v14  ;;  %2913 = vmatpush3.msra.mxu0 %v2513_v17 }
  0x30   : > { %2914 = vmatprep.subr.mxu0 %v2512_v18 }
  0x31   : > { %2915 = vmatpush3.msra.mxu0 %v2512_v18 }
  0x32   : > { %2916 = vmatprep.subr.mxu0 %v2511_v19 }
  0x33   : > { %2917 = vmatpush3.msra.mxu0 %v2511_v19 }
  0x34   : > { %2918 = vmatprep.subr.mxu0 %v2510_v20 }
  0x35   : > { %2919 = vmatpush3.msra.mxu0 %v2510_v20 }
  0x36   : > { %2920 = vmatprep.subr.mxu0 %v2509_v21 }
  0x37   : > { %2921 = vmatpush3.msra.mxu0 %v2509_v21 }
  0x38   : > { %2922 = vmatprep.subr.mxu0 %v2508_v22 }
  0x39   : > { %2923 = vmatpush3.msra.mxu0 %v2508_v22  ;;  %v2531_v22 = vld [vmem:[%s4511_s4 + $0x170] sm:$0xff] }
  0x3a   : > { %2924 = vmatprep.subr.mxu0 %v2507_v23 }
  0x3b   : > { %2925 = vmatpush3.msra.mxu0 %v2507_v23  ;;  %v2539_v23 = vld [vmem:[%s4512_s5 + $0x70] sm:$0xff] }
  0x3c   : > { %2926 = vmatprep.subr.mxu0 %v2506_v24 }
  0x3d   : > { %2927 = vmatpush3.msra.mxu0 %v2506_v24 }
  0x3e   : > { %2928 = vmatprep.subr.mxu0 %v2505_v41 }
  0x3f   : > { %2929 = vmatpush3.msra.mxu0 %v2505_v41 }
  0x40   : > { %2930 = vmatprep.subr.mxu0 %v2504_v43 }
  0x41   : > { %2931 = vmatpush3.msra.mxu0 %v2504_v43  ;;  %v3844_v43 = vld [vmem:[%s590_s20] sm:$0xff] }
  0x42   : > { %2932 = vmatprep.subr.mxu0 %v2503_v45 }
  0x43   : > { %2933 = vmatpush3.msra.mxu0 %v2503_v45  ;;  %v2527_v45 = vld [vmem:[%s4511_s4 + $0x150] sm:$0xff] }
  0x44   : > { %2934 = vmatprep.subr.mxu0 %v2502_v47 }
  0x45   : > { %2935 = vmatpush3.msra.mxu0 %v2502_v47  ;;  %v2535_v47 = vld [vmem:[%s4512_s5 + $0x50] sm:$0xff] }
  0x46   : > { %2936 = vmatprep.subr.mxu0 %v2501_v49 }
  0x47   : > { %2937 = vmatpush3.msra.mxu0 %v2501_v49  ;;  %v2534_v49 = vld [vmem:[%s4512_s5 + $0x48] sm:$0xff] }
  0x48   : > { %2976 = vmatprep.subr.mxu0 %v2532_v51 }
  0xe3   : > { %v671_v25 = vpop.f32.mrf.mxu0 }
  0xe4   : > { %2898 = vmatmul.mubr.msk.f32.vlgmr.msra.gmra.mxu1 %vm693_vm2, %v671_v25 }
  0xe5   : > { %v2874_v27 = vpop.f32.mrf.mxu0  ;;  %2900 = vmatprep.mubr.msk.f32.mxu1 %vm3430_vm0, %v3429_v0  ;;  %2942 = vmatpush3.msra.mxu1 %v801_v14 }
  0xe6   : > { %2943 = vmatprep.subr.mxu1 %v800_v26 }
  0xe7   : > { %v676_v29 = vpop.f32.mrf.mxu0  ;;  %2944 = vmatpush3.msra.mxu1 %v800_v26 }
  0xe8   : > { %2901 = vmatmul.mubr.msk.f32.gmra.mxu1 %vm693_vm2, %v676_v29  ;;  %2945 = vmatprep.subr.mxu1 %v799_v28 }
  0xe9   : > { %v2877_v31 = vpop.f32.mrf.mxu0  ;;  %2903 = vmatprep.mubr.msk.f32.mxu1 %vm3430_vm0, %v3429_v0  ;;  %2946 = vmatpush3.msra.mxu1 %v799_v28 }
  0xea   : > { %2947 = vmatprep.subr.mxu1 %v798_v30  ;;  %v2538_v31 = vld [vmem:[%s4512_s5 + $0x68] sm:$0xff] }
  0xeb   : > { %v681_v33 = vpop.f32.mrf.mxu0  ;;  %2948 = vmatpush3.msra.mxu1 %v798_v30  ;;  %v2530_v30 = vld [vmem:[%s4511_s4 + $0x168] sm:$0xff] }
  0xec   : > { %2904 = vmatmul.mubr.msk.f32.gmra.mxu1 %vm693_vm2, %v681_v33  ;;  %2949 = vmatprep.subr.mxu1 %v797_v32 }
  0xed   : > { %v2880_v35 = vpop.f32.mrf.mxu0  ;;  %2950 = vmatpush3.msra.mxu1 %v797_v32 }
  0xee   : > { %2951 = vmatprep.subr.mxu1 %v796_v34 }
  0xef   : > { %2952 = vmatpush3.msra.mxu1 %v796_v34  ;;  %v2529_v34 = vld [vmem:[%s4511_s4 + $0x160] sm:$0xff] }
  0xf0   : > { %2953 = vmatprep.subr.mxu1 %v795_v36 }
  0xf1   : > { %2954 = vmatpush3.msra.mxu1 %v795_v36  ;;  %v2537_v36 = vld [vmem:[%s4512_s5 + $0x60] sm:$0xff] }
  0xf2   : > { %2955 = vmatprep.subr.mxu1 %v794_v37 }
  0xf3   : > { %2956 = vmatpush3.msra.mxu1 %v794_v37 }
  0xf4   : > { %2957 = vmatprep.subr.mxu1 %v793_v38 }
  0xf5   : > { %2958 = vmatpush3.msra.mxu1 %v793_v38 }
  0xf6   : > { %2959 = vmatprep.subr.mxu1 %v792_v39 }
  0xf7   : > { %2960 = vmatpush3.msra.mxu1 %v792_v39  ;;  %v2528_v39 = vld [vmem:[%s4511_s4 + $0x158] sm:$0xff] }
  0xf8   : > { %2961 = vmatprep.subr.mxu1 %v791_v40 }
  0xf9   : > { %2962 = vmatpush3.msra.mxu1 %v791_v40  ;;  %v2536_v40 = vld [vmem:[%s4512_s5 + $0x58] sm:$0xff] }
  0xfa   : > { %2963 = vmatprep.subr.mxu1 %v790_v42 }
  0xfb   : > { %2964 = vmatpush3.msra.mxu1 %v790_v42 }
  0xfc   : > { %2965 = vmatprep.subr.mxu1 %v789_v44 }
  0xfd   : > { %2966 = vmatpush3.msra.mxu1 %v789_v44  ;;  %v3846_v44 = vld [vmem:[%s590_s20 + $0x8] sm:$0xff] }
  0xfe   : > { %2967 = vmatprep.subr.mxu1 %v788_v46 }
  0xff   : > { %2968 = vmatpush3.msra.mxu1 %v788_v46  ;;  %v3851_v46 = vld [vmem:[%s590_s20 + $0x10] sm:$0xf] }
 0x100   : > { %2969 = vmatprep.subr.mxu1 %v787_v48 }
 0x101   : > { %2970 = vmatpush3.msra.mxu1 %v787_v48  ;;  %v2526_v48 = vld [vmem:[%s4511_s4 + $0x148] sm:$0xff] }
 0x102   : > { %2971 = vmatprep.subr.mxu1 %v786_v50 }
 0x103   : > { %2972 = vmatpush3.msra.mxu1 %v786_v50  ;;  %v1110_v50 = vrot.slane %v3844_v43, 2 }
 0x104   : > { %3011 = vmatprep.subr.mxu1 %v2540_v52 }
 0x1a4   : > { %v769_v55 = vpop.f32.mrf.mxu1 }
 0x1a5   : > { %v1391_v57 = vmul.f32 %v2556_v53, %v769_v55  ;;  %v823_v61 = vrot.slane %v769_v55, 2  ;;  %v906_v63 = vrot.slane %v769_v55, 1  ;;  %v1006_v18 = vrot.slane %v769_v55, 3  ;;  %v2524_v55 = vld [vmem:[%s4511_s4 + $0x138] sm:$0xff] }
 0x1a6   : > { %v2899_v58 = vpop.f32.mrf.mxu1 }
 0x1a7   : > { %v3755_v60 = vadd.f32 %v2557_v56, %v1391_v57  ;;  %v1097_v57 = vld [vmem:[%s4512_s5 + $0x38] sm:$0xff] }
 0x1a8   : > { %v3757_v62 = vpop.f32.mrf.mxu1 }
 0x1a9   : > { %v1404_v1 = vmax.f32 %v3755_v60, 0.0  ;;  %v824_v2 = vrot.slane %v3757_v62, 2  ;;  %v907_v3 = vrot.slane %v3757_v62, 1  ;;  %v1392_v4 = vmul.f32 %v2556_v53, %v3757_v62  ;;  %v2600_v60 = vld [vmem:[%s4515_s8 + $0x70] sm:$0xff] }
 0x1aa   : > { %v2902_v5 = vpop.f32.mrf.mxu1  ;;  %v1007_v9 = vrot.slane %v3757_v62, 3  ;;  %v2574_v62 = vld [vmem:[%s4514_s7 + $0xf0] sm:$0xff] }
 0x1ab   : > { %v825_v7 = vsel %vm822_vm3, %v823_v61, %v824_v2  ;;  %v908_v8 = vsel %vm905_vm4, %v906_v63, %v907_v3  ;;  %v1402_v10 = vadd.f32 %v2557_v56, %v1392_v4  ;;  %v1420_v15 = vsel %vm1411_vm5, %v1404_v1, 0.0  ;;  %v2523_v61 = vld [vmem:[%s4511_s4 + $0x130] sm:$0xff]  ;;  %v2521_v4 = vld [vmem:[%s4511_s4 + $0x120] sm:$0xff] }
 0x1ac   : > { %v3770_v11 = vpop.f32.mrf.mxu1  ;;  %2938 = vmatprep.mubr.f32.mxu0 %v825_v7  ;;  %2973 = vmatprep.mubr.f32.mxu1 %v908_v8  ;;  %v1485_v24 = vrot.slane %v1420_v15, 1  ;;  %v1670_v26 = vrot.slane %v1420_v15, 2  ;;  %v1008_v29 = vsel %vm1005_vm6, %v1006_v18, %v1007_v9  ;;  %v1096_v63 = vld [vmem:[%s4512_s5 + $0x30] sm:$0xff]  ;;  %v1094_v5 = vld [vmem:[%s4512_s5 + $0x20] sm:$0xff]  ;;  %v2520_v7 = vld [vmem:[%s4511_s4 + $0x118] sm:$0xff]  ;;  %v1195_v15 = vrot.slane %v3846_v44, 1 }
 0x1ad   : > { %v826_v12 = vrot.slane %v3770_v11, 2  ;;  %v909_v13 = vrot.slane %v3770_v11, 1  ;;  %v1393_v14 = vmul.f32 %v2556_v53, %v3770_v11  ;;  %v3779_v16 = vmax.f32 %v1402_v10, 0.0  ;;  %v1093_v8 = vld [vmem:[%s4512_s5 + $0x18] sm:$0xff]  ;;  %v2519_v10 = vld [vmem:[%s4511_s4 + $0x110] sm:$0xff] }
 0x1ae   : > { %v2905_v17 = vpop.f32.mrf.mxu1  ;;  %v1113_v53 = vrot.slane %v3851_v46, 2  ;;  %v1197_v18 = vrot.slane %v3851_v46, 1 }
 0x1af   : > { %v3782_v19 = vadd.f32 %v2557_v56, %v1393_v14  ;;  %v827_v20 = vsel %vm822_vm3, %v824_v2, %v826_v12  ;;  %v910_v21 = vsel %vm905_vm4, %v907_v3, %v909_v13  ;;  %v1486_v25 = vrot.slane %v3779_v16, 1  ;;  %v2522_v2 = vld [vmem:[%s4511_s4 + $0x128] sm:$0xff]  ;;  %v1092_v12 = vld [vmem:[%s4512_s5 + $0x10] sm:$0xff] }
 0x1b0   : > { %2939 = vmatmul.mubr.f32.vlgmr.msra.gmra.mxu0 %v827_v20  ;;  %2974 = vmatmul.mubr.f32.vlgmr.msra.gmra.mxu1 %v910_v21  ;;  %v1671_v27 = vrot.slane %v3779_v16, 2  ;;  %v1095_v3 = vld [vmem:[%s4512_s5 + $0x28] sm:$0xff]  ;;  %v1194_v14 = vrot.slane %v3844_v43, 1  ;;  %v2517_v20 = vld [vmem:[%s4511_s4 + $0x100] sm:$0xff]  ;;  %v1009_v21 = vrot.slane %v3770_v11, 3  ;;  %v2552_v11 = vld [vmem:[%s4512_s5 + $0xb8] sm:$0xff] }
 0x1b1   : > { %v1406_v28 = vmax.f32 %v3782_v19, 0.0  ;;  %2977 = vmatpush3.msra.mxu0 %v2532_v51  ;;  %3012 = vmatpush3.msra.mxu1 %v2540_v52  ;;  %v3806_v32 = vsel %vm905_vm4, %v1485_v24, %v1486_v25  ;;  %v1111_v51 = vrot.slane %v3846_v44, 2  ;;  %v2525_v52 = vld [vmem:[%s4511_s4 + $0x140] sm:$0xff]  ;;  %v2518_v13 = vld [vmem:[%s4511_s4 + $0x108] sm:$0xff]  ;;  %v1198_v24 = vsel %vm905_vm4, %v1195_v15, %v1197_v18  ;;  %v1455_v18 = vld [vmem:[%s4514_s7 + $0x30] sm:$0xff] }
 0x1b2   : > { %2978 = vmatprep.subr.mxu0 %v2531_v22  ;;  %3008 = vmatprep.mubr.f32.mxu0 %v1008_v29  ;;  %v3809_v33 = vsel %vm822_vm3, %v1670_v26, %v1671_v27  ;;  %v1091_v17 = vld [vmem:[%s4512_s5 + $0x8] sm:$0xff]  ;;  %v2575_v26 = vld [vmem:[%s4514_s7 + $0xf8] sm:$0xff] }
 0x1b3   : > { %3013 = vmatprep.subr.mxu1 %v2539_v23  ;;  %2979 = vmatpush3.msra.mxu0 %v2531_v22  ;;  %v3818_v35 = vsel %vm1416_vm7, %v1406_v28, 0.0  ;;  %v1112_v56 = vsel %vm822_vm3, %v1110_v50, %v1111_v51  ;;  %v1114_v58 = vsel %vm822_vm3, %v1111_v51, %v1113_v53  ;;  %v1090_v22 = vld [vmem:[%s4512_s5] sm:$0xff]  ;;  %v2573_v29 = vld [vmem:[%s4514_s7 + $0xe8] sm:$0xff] }
 0x1b4   : > { %3014 = vmatpush3.msra.mxu1 %v2539_v23  ;;  %2980 = vmatprep.subr.mxu0 %v2530_v30  ;;  %v1488_v37 = vrot.slane %v3818_v35, 1  ;;  %v1673_v38 = vrot.slane %v3818_v35, 2  ;;  %v1196_v23 = vsel %vm905_vm4, %v1194_v14, %v1195_v15  ;;  %v2569_v50 = vld [vmem:[%s4514_s7 + $0xc8] sm:$0xff]  ;;  %v2545_v51 = vld [vmem:[%s4512_s5 + $0x80] sm:$0xff]  ;;  %v1456_v15 = vld [vmem:[%s4514_s7 + $0x38] sm:$0xff] }
 0x1b5   : > { %3015 = vmatprep.subr.mxu1 %v2538_v31  ;;  %2981 = vmatpush3.msra.mxu0 %v2530_v30  ;;  %v2549_v30 = vld [vmem:[%s4512_s5 + $0xa0] sm:$0xff]  ;;  %v2579_v19 = vld [vmem:[%s4514_s7 + $0x108] sm:$0xff] }
 0x1b6   : > { %3016 = vmatpush3.msra.mxu1 %v2538_v31  ;;  %2982 = vmatprep.subr.mxu0 %v2529_v34  ;;  %v3837_v41 = vsel %vm905_vm4, %v1486_v25, %v1488_v37  ;;  %v3842_v42 = vsel %vm822_vm3, %v1671_v27, %v1673_v38  ;;  %v1010_v25 = vsel %vm1005_vm6, %v1007_v9, %v1009_v21  ;;  %v2551_v27 = vld [vmem:[%s4512_s5 + $0xb0] sm:$0xff]  ;;  %v2550_v9 = vld [vmem:[%s4512_s5 + $0xa8] sm:$0xff]  ;;  %v2572_v31 = vld [vmem:[%s4514_s7 + $0xe0] sm:$0xff] }
 0x1b7   : > { %3017 = vmatprep.subr.mxu1 %v2537_v36  ;;  %2983 = vmatpush3.msra.mxu0 %v2529_v34  ;;  %v2548_v34 = vld [vmem:[%s4512_s5 + $0x98] sm:$0xff]  ;;  %v2568_v53 = vld [vmem:[%s4514_s7 + $0xc0] sm:$0xff]  ;;  %v2591_v21 = vld [vmem:[%s4514_s7 + $0x168] sm:$0xff] }
 0x1b8   : > { %3018 = vmatpush3.msra.mxu1 %v2537_v36  ;;  %2984 = vmatprep.subr.mxu0 %v2528_v39  ;;  %v2571_v36 = vld [vmem:[%s4514_s7 + $0xd8] sm:$0xff]  ;;  %v1457_v14 = vld [vmem:[%s4514_s7 + $0x40] sm:$0xff]  ;;  %v1762_v35 = vld [vmem:[%s4515_s8 + $0x8] sm:$0xff] }
 0x1b9   : > { %3019 = vmatprep.subr.mxu1 %v2536_v40  ;;  %2985 = vmatpush3.msra.mxu0 %v2528_v39  ;;  %v2547_v39 = vld [vmem:[%s4512_s5 + $0x90] sm:$0xff] }
 0x1ba   : > { %3020 = vmatpush3.msra.mxu1 %v2536_v40  ;;  %2986 = vmatprep.subr.mxu0 %v2527_v45  ;;  %v2570_v40 = vld [vmem:[%s4514_s7 + $0xd0] sm:$0xff] }
 0x1bb   : > { %3021 = vmatprep.subr.mxu1 %v2535_v47  ;;  %2987 = vmatpush3.msra.mxu0 %v2527_v45  ;;  %v1287_v45 = vrot.slane %v3844_v43, 3 }
 0x1bc   : > { %3022 = vmatpush3.msra.mxu1 %v2535_v47  ;;  %2988 = vmatprep.subr.mxu0 %v2526_v48  ;;  %v1288_v47 = vrot.slane %v3846_v44, 3 }
 0x1bd   : > { %3023 = vmatprep.subr.mxu1 %v2534_v49  ;;  %2989 = vmatpush3.msra.mxu0 %v2526_v48  ;;  %v2546_v48 = vld [vmem:[%s4512_s5 + $0x88] sm:$0xff] }
 0x1be   : > { %3024 = vmatpush3.msra.mxu1 %v2534_v49  ;;  %2990 = vmatprep.subr.mxu0 %v2525_v52  ;;  %v1290_v49 = vrot.slane %v3851_v46, 3 }
 0x1bf   : > { %3025 = vmatprep.subr.mxu1 %v2533_v54  ;;  %2991 = vmatpush3.msra.mxu0 %v2525_v52  ;;  %v1289_v52 = vsel %vm1005_vm6, %v1287_v45, %v1288_v47 }
 0x1c0   : > { %3026 = vmatpush3.msra.mxu1 %v2533_v54  ;;  %2992 = vmatprep.subr.mxu0 %v2524_v55  ;;  %v1291_v54 = vsel %vm1005_vm6, %v1288_v47, %v1290_v49  ;;  %v2598_v49 = vld [vmem:[%s4515_s8 + $0x60] sm:$0xff] }
 0x1c1   : > { %3027 = vmatprep.mubr.msk.f32.mxu1 %vm693_vm2, %v1112_v56  ;;  %3030 = vmatprep.subr.mxu1 %v1097_v57  ;;  %v1464_v56 = vld [vmem:[%s4514_s7 + $0x78] sm:$0xff] }
 0x1c2   : > { %2993 = vmatpush3.msra.mxu0 %v2524_v55  ;;  %3028 = vmatmul.mubr.msk.f32.vlgmr.msra.gmra.mxu1 %vm693_vm2, %v1114_v58  ;;  %v2567_v55 = vld [vmem:[%s4514_s7 + $0xb8] sm:$0xff]  ;;  %v1463_v58 = vld [vmem:[%s4514_s7 + $0x70] sm:$0xff] }
 0x1c3   : > { %3031 = vmatpush3.msra.mxu1 %v1097_v57  ;;  %2994 = vmatprep.subr.mxu0 %v2523_v61  ;;  %v2566_v57 = vld [vmem:[%s4514_s7 + $0xb0] sm:$0xff] }
 0x1c4   : > { %3032 = vmatprep.subr.mxu1 %v1096_v63  ;;  %2995 = vmatpush3.msra.mxu0 %v2523_v61  ;;  %v2565_v61 = vld [vmem:[%s4514_s7 + $0xa8] sm:$0xff] }
 0x1c5   : > { %3033 = vmatpush3.msra.mxu1 %v1096_v63  ;;  %2996 = vmatprep.subr.mxu0 %v2522_v2  ;;  %v1462_v63 = vld [vmem:[%s4514_s7 + $0x68] sm:$0xff] }
 0x1c6   : > { %3034 = vmatprep.subr.mxu1 %v1095_v3  ;;  %2997 = vmatpush3.msra.mxu0 %v2522_v2  ;;  %v2564_v2 = vld [vmem:[%s4514_s7 + $0xa0] sm:$0xff] }
 0x1c7   : > { %3035 = vmatpush3.msra.mxu1 %v1095_v3  ;;  %2998 = vmatprep.subr.mxu0 %v2521_v4  ;;  %v1461_v3 = vld [vmem:[%s4514_s7 + $0x60] sm:$0xff] }
 0x1c8   : > { %3036 = vmatprep.subr.mxu1 %v1094_v5  ;;  %2999 = vmatpush3.msra.mxu0 %v2521_v4  ;;  %v2563_v4 = vld [vmem:[%s4514_s7 + $0x98] sm:$0xff] }
 0x1c9   : > { %3037 = vmatpush3.msra.mxu1 %v1094_v5  ;;  %3000 = vmatprep.subr.mxu0 %v2520_v7  ;;  %v1460_v5 = vld [vmem:[%s4514_s7 + $0x58] sm:$0xff] }
 0x1ca   : > { %3038 = vmatprep.subr.mxu1 %v1093_v8  ;;  %3001 = vmatpush3.msra.mxu0 %v2520_v7  ;;  %v2562_v7 = vld [vmem:[%s4514_s7 + $0x90] sm:$0xff] }
 0x1cb   : > { %3039 = vmatpush3.msra.mxu1 %v1093_v8  ;;  %3002 = vmatprep.subr.mxu0 %v2519_v10  ;;  %v1459_v8 = vld [vmem:[%s4514_s7 + $0x50] sm:$0xff] }
 0x1cc   : > { %3040 = vmatprep.subr.mxu1 %v1092_v12  ;;  %3003 = vmatpush3.msra.mxu0 %v2519_v10  ;;  %v2561_v10 = vld [vmem:[%s4514_s7 + $0x88] sm:$0xff] }
 0x1cd   : > { %3041 = vmatpush3.msra.mxu1 %v1092_v12  ;;  %3004 = vmatprep.subr.mxu0 %v2518_v13  ;;  %v1458_v12 = vld [vmem:[%s4514_s7 + $0x48] sm:$0xff] }
 0x1ce   : > { %3042 = vmatprep.subr.mxu1 %v1091_v17  ;;  %3005 = vmatpush3.msra.mxu0 %v2518_v13  ;;  %v2560_v13 = vld [vmem:[%s4514_s7 + $0x80] sm:$0xff] }
 0x1cf   : > { %3043 = vmatpush3.msra.mxu1 %v1091_v17  ;;  %3006 = vmatprep.subr.mxu0 %v2517_v20  ;;  %v2593_v17 = vld [vmem:[%s4514_s7 + $0x178] sm:$0xff] }
 0x1d0   : > { %3044 = vmatprep.subr.mxu1 %v1090_v22  ;;  %3007 = vmatpush3.msra.mxu0 %v2517_v20  ;;  %v2592_v20 = vld [vmem:[%s4514_s7 + $0x170] sm:$0xff] }
 0x1d1   : > { %3045 = vmatpush3.msra.mxu1 %v1090_v22  ;;  %3046 = vmatprep.mubr.msk.f32.mxu1 %vm693_vm2, %v1196_v23  ;;  %v1453_v22 = vld [vmem:[%s4514_s7 + $0x20] sm:$0xff] }
 0x1d2   : > { %3009 = vmatmul.mubr.f32.vlgmr.msra.gmra.mxu0 %v1010_v25  ;;  %3047 = vmatmul.mubr.msk.f32.vlgmr.msra.gmra.mxu1 %vm693_vm2, %v1198_v24  ;;  %v2590_v23 = vld [vmem:[%s4514_s7 + $0x160] sm:$0xff]  ;;  %v2589_v24 = vld [vmem:[%s4514_s7 + $0x158] sm:$0xff]  ;;  %v2588_v25 = vld [vmem:[%s4514_s7 + $0x150] sm:$0xff] }
 0x1d3   : > { %3049 = vmatprep.subr.mxu0 %v2552_v11  ;;  %3068 = vmatprep.subr.mxu1 %v3429_v0 }
 0x1d4   : > { %3050 = vmatpush3.msra.mxu0 %v2552_v11  ;;  %3069 = vmatpush3.msra.mxu1 %v2575_v26  ;;  %v1451_v11 = vld [vmem:[%s4514_s7 + $0x10] sm:$0xff]  ;;  %v2587_v26 = vld [vmem:[%s4514_s7 + $0x148] sm:$0xff] }
 0x1d5   : > { %3051 = vmatprep.subr.mxu0 %v2551_v27  ;;  %3070 = vmatprep.subr.mxu1 %v3429_v0 }
 0x1d6   : > { %3052 = vmatpush3.msra.mxu0 %v2551_v27  ;;  %3071 = vmatpush3.msra.mxu1 %v2574_v62  ;;  %v2558_v27 = vld [vmem:[%s4521_s14] ss:$0 sm:$0xff] }
 0x1d7   : > { %3053 = vmatprep.subr.mxu0 %v2550_v9  ;;  %3072 = vmatprep.subr.mxu1 %v3429_v0  ;;  %v1449_v62 = vld [vmem:[%s4514_s7] sm:$0xff]  ;;  %v1432_v45 = vmul.f32 %v2558_v27, %v3851_v46 }
 0x1d8   : > { %3054 = vmatpush3.msra.mxu0 %v2550_v9  ;;  %3073 = vmatpush3.msra.mxu1 %v2573_v29  ;;  %v2586_v9 = vld [vmem:[%s4514_s7 + $0x140] sm:$0xff]  ;;  %v1430_v29 = vmul.f32 %v2558_v27, %v3844_v43  ;;  %v2601_v43 = vld [vmem:[%s4515_s8 + $0x78] sm:$0xff] }
 0x1d9   : > { %3055 = vmatprep.subr.mxu0 %v2549_v30  ;;  %3074 = vmatprep.subr.mxu1 %v3429_v0 }
 0x1da   : > { %3056 = vmatpush3.msra.mxu0 %v2549_v30  ;;  %3075 = vmatpush3.msra.mxu1 %v2572_v31  ;;  %v2559_v30 = vld [vmem:[%s4522_s15] ss:$0 sm:$0xff]  ;;  %v2585_v31 = vld [vmem:[%s4514_s7 + $0x138] sm:$0xff] }
 0x1db   : > { %3057 = vmatprep.subr.mxu0 %v2548_v34  ;;  %3076 = vmatprep.subr.mxu1 %v3429_v0 }
 0x1dc   : > { %3058 = vmatpush3.msra.mxu0 %v2548_v34  ;;  %3077 = vmatpush3.msra.mxu1 %v2571_v36  ;;  %v1431_v34 = vmul.f32 %v2558_v27, %v3846_v44  ;;  %v2584_v36 = vld [vmem:[%s4514_s7 + $0x130] sm:$0xff]  ;;  %v2599_v44 = vld [vmem:[%s4515_s8 + $0x68] sm:$0xff] }
 0x1dd   : > { %3059 = vmatprep.subr.mxu0 %v2547_v39  ;;  %3078 = vmatprep.subr.mxu1 %v3429_v0 }
 0x1de   : > { %3060 = vmatpush3.msra.mxu0 %v2547_v39  ;;  %3079 = vmatpush3.msra.mxu1 %v2570_v40  ;;  %v1440_v39 = vadd.f32 %v2559_v30, %v1430_v29  ;;  %v1441_v40 = vadd.f32 %v2559_v30, %v1431_v34  ;;  %v2114_v29 = vld [vmem:[%s4517_s10 + $0x28] sm:$0xff]  ;;  %v2628_v34 = vld [vmem:[%s4517_s10 + $0x70] sm:$0xff] }
 0x1df   : > { %3061 = vmatprep.subr.mxu0 %v2546_v48  ;;  %3080 = vmatprep.subr.mxu1 %v3429_v0 }
 0x1e0   : > { %3062 = vmatpush3.msra.mxu0 %v2546_v48  ;;  %3081 = vmatpush3.msra.mxu1 %v2569_v50  ;;  %v1443_v47 = vmax.f32 %v1440_v39, 0.0  ;;  %v2582_v48 = vld [vmem:[%s4514_s7 + $0x120] sm:$0xff]  ;;  %v4185_v46 = vmax.f32 %v1441_v40, 0.0  ;;  %v2597_v50 = vld [vmem:[%s4515_s8 + $0x58] sm:$0xff]  ;;  %v2627_v39 = vld [vmem:[%s4517_s10 + $0x68] sm:$0xff] }
 0x1e1   : > { %3063 = vmatprep.subr.mxu0 %v2545_v51  ;;  %3082 = vmatprep.subr.mxu1 %v3429_v0  ;;  %v2625_v40 = vld [vmem:[%s4517_s10 + $0x58] sm:$0xff] }
 0x1e2   : > { %3064 = vmatpush3.msra.mxu0 %v2545_v51  ;;  %3065 = vmatprep.mubr.msk.f32.mxu0 %vm693_vm2, %v1289_v52  ;;  %v4197_v51 = vsel %vm1411_vm5, %v1443_v47, 0.0  ;;  %v1442_v52 = vadd.f32 %v2559_v30, %v1432_v45  ;;  %v2113_v30 = vld [vmem:[%s4517_s10 + $0x20] sm:$0xff]  ;;  %v2624_v45 = vld [vmem:[%s4517_s10 + $0x50] sm:$0xff]  ;;  %v2623_v47 = vld [vmem:[%s4517_s10 + $0x48] sm:$0xff] }
 0x1e3   : > { %3083 = vmatpush3.msra.mxu1 %v2568_v53  ;;  %3066 = vmatmul.mubr.msk.f32.vlgmr.msra.gmra.mxu0 %vm693_vm2, %v1291_v54  ;;  %v2580_v53 = vld [vmem:[%s4514_s7 + $0x110] sm:$0xff] }
 0x1e4   : > { %3084 = vmatprep.subr.mxu1 %v3429_v0  ;;  %3109 = vmatprep.subr.mxu0 %v3429_v0  ;;  %v2596_v54 = vld [vmem:[%s4515_s8 + $0x50] sm:$0xff] }
 0x1e5   : > { %3085 = vmatpush3.msra.mxu1 %v2567_v55  ;;  %3110 = vmatpush3.msra.mxu0 %v1464_v56  ;;  %v1781_v55 = vrot.slane %v4197_v51, 1  ;;  %v1782_v56 = vrot.slane %v4185_v46, 1 }
 0x1e6   : > { %3086 = vmatprep.subr.mxu1 %v3429_v0  ;;  %3111 = vmatprep.subr.mxu0 %v3429_v0 }
 0x1e7   : > { %3087 = vmatpush3.msra.mxu1 %v2566_v57  ;;  %3112 = vmatpush3.msra.mxu0 %v1463_v58  ;;  %v1445_v57 = vmax.f32 %v1442_v52, 0.0  ;;  %v2578_v58 = vld [vmem:[%s4514_s7 + $0x100] sm:$0xff] }
 0x1e8   : > { %3088 = vmatprep.subr.mxu1 %v3429_v0  ;;  %3113 = vmatprep.subr.mxu0 %v3429_v0 }
 0x1e9   : > { %3089 = vmatpush3.msra.mxu1 %v2565_v61  ;;  %3114 = vmatpush3.msra.mxu0 %v1462_v63  ;;  %v2594_v61 = vld [vmem:[%s4515_s8 + $0x40] sm:$0xff]  ;;  %v1783_v63 = vsel %vm905_vm4, %v1781_v55, %v1782_v56 }
 0x1ea   : > { %3090 = vmatprep.subr.mxu1 %v3429_v0  ;;  %3115 = vmatprep.subr.mxu0 %v3429_v0 }
 0x1eb   : > { %3091 = vmatpush3.msra.mxu1 %v2564_v2  ;;  %3116 = vmatpush3.msra.mxu0 %v1461_v3  ;;  %v4236_v2 = vsel %vm1416_vm7, %v1445_v57, 0.0  ;;  %v1768_v3 = vld [vmem:[%s4515_s8 + $0x38] sm:$0xff] }
 0x1ec   : > { %3092 = vmatprep.subr.mxu1 %v3429_v0  ;;  %3117 = vmatprep.subr.mxu0 %v3429_v0 }
 0x1ed   : > { %3093 = vmatpush3.msra.mxu1 %v2563_v4  ;;  %3118 = vmatpush3.msra.mxu0 %v1460_v5  ;;  %v2615_v4 = vld [vmem:[%s4515_s8 + $0xb8] sm:$0xff]  ;;  %v1767_v5 = vld [vmem:[%s4515_s8 + $0x30] sm:$0xff] }
 0x1ee   : > { %3094 = vmatprep.subr.mxu1 %v3429_v0  ;;  %3119 = vmatprep.subr.mxu0 %v3429_v0 }
 0x1ef   : > { %3095 = vmatpush3.msra.mxu1 %v2562_v7  ;;  %3120 = vmatpush3.msra.mxu0 %v1459_v8  ;;  %v1784_v7 = vrot.slane %v4236_v2, 1  ;;  %v2614_v8 = vld [vmem:[%s4515_s8 + $0xb0] sm:$0xff] }
 0x1f0   : > { %3096 = vmatprep.subr.mxu1 %v3429_v0  ;;  %3121 = vmatprep.subr.mxu0 %v3429_v0 }
 0x1f1   : > { %3097 = vmatpush3.msra.mxu1 %v2561_v10  ;;  %3122 = vmatpush3.msra.mxu0 %v1458_v12  ;;  %v2613_v10 = vld [vmem:[%s4515_s8 + $0xa8] sm:$0xff]  ;;  %v1785_v12 = vsel %vm905_vm4, %v1782_v56, %v1784_v7 }
 0x1f2   : > { %3098 = vmatprep.subr.mxu1 %v3429_v0  ;;  %3123 = vmatprep.subr.mxu0 %v3429_v0 }
 0x1f3   : > { %3099 = vmatpush3.msra.mxu1 %v2560_v13  ;;  %3100 = vmatprep.mubr.msk.f32.mxu1 %vm3430_vm0, %v3429_v0  ;;  %v1765_v13 = vld [vmem:[%s4515_s8 + $0x20] sm:$0xff] }
 0x1f4   : > { %3124 = vmatpush3.msra.mxu0 %v1457_v14  ;;  %3101 = vmatmul.mubr.f32.vlgmr.msra.gmra.mxu1 %v3806_v32  ;;  %v1454_v32 = vld [vmem:[%s4514_s7 + $0x28] sm:$0xff]  ;;  %v2612_v14 = vld [vmem:[%s4515_s8 + $0xa0] sm:$0xff] }
 0x1f5   : > { %3125 = vmatprep.subr.mxu0 %v3429_v0  ;;  %3150 = vmatprep.subr.mxu1 %v3429_v0 }
 0x1f6   : > { %3126 = vmatpush3.msra.mxu0 %v1456_v15  ;;  %3151 = vmatpush3.msra.mxu1 %v2593_v17  ;;  %v2611_v15 = vld [vmem:[%s4515_s8 + $0x98] sm:$0xff]  ;;  %v1763_v17 = vld [vmem:[%s4515_s8 + $0x10] sm:$0xff] }
 0x1f7   : > { %3127 = vmatprep.subr.mxu0 %v3429_v0  ;;  %3152 = vmatprep.subr.mxu1 %v3429_v0 }
 0x1f8   : > { %3103 = vmatprep.mubr.msk.f32.mxu1 %vm3430_vm0, %v3429_v0  ;;  %3128 = vmatpush3.msra.mxu0 %v1455_v18  ;;  %v2610_v18 = vld [vmem:[%s4515_s8 + $0x90] sm:$0xff] }
 0x1f9   : > { %3153 = vmatpush3.msra.mxu1 %v2592_v20  ;;  %3129 = vmatprep.subr.mxu0 %v3429_v0  ;;  %v1967_v20 = vrot.slane %v4197_v51, 2 }
 0x1fa   : > { %3104 = vmatmul.mubr.f32.gmra.mxu1 %v3837_v41  ;;  %3154 = vmatprep.subr.mxu1 %v3429_v0  ;;  %v1452_v41 = vld [vmem:[%s4514_s7 + $0x18] sm:$0xff] }
 0x1fb   : > { %3130 = vmatpush3.msra.mxu0 %v1454_v32  ;;  %3155 = vmatpush3.msra.mxu1 %v2591_v21  ;;  %v1968_v32 = vrot.slane %v4185_v46, 2  ;;  %v1761_v21 = vld [vmem:[%s4515_s8] sm:$0xff] }
 0x1fc   : > { %3131 = vmatprep.subr.mxu0 %v3429_v0  ;;  %3156 = vmatprep.subr.mxu1 %v3429_v0 }
 0x1fd   : > { %3106 = vmatprep.mubr.msk.f32.mxu1 %vm3430_vm0, %v3429_v0  ;;  %3132 = vmatpush3.msra.mxu0 %v1453_v22  ;;  %v2608_v22 = vld [vmem:[%s4515_s8 + $0x80] sm:$0xff] }
 0x1fe   : > { %3157 = vmatpush3.msra.mxu1 %v2590_v23  ;;  %3133 = vmatprep.subr.mxu0 %v3429_v0  ;;  %v1969_v23 = vsel %vm822_vm3, %v1967_v20, %v1968_v32 }
 0x1ff   : > { %3107 = vmatmul.mubr.f32.gmra.mxu1 %v1488_v37  ;;  %3158 = vmatprep.subr.mxu1 %v3429_v0  ;;  %v1450_v37 = vld [vmem:[%s4514_s7 + $0x8] sm:$0xff] }
 0x200   : > { %3134 = vmatpush3.msra.mxu0 %v1452_v41  ;;  %3159 = vmatpush3.msra.mxu1 %v2589_v24  ;;  %v1970_v41 = vrot.slane %v4236_v2, 2 }
 0x201   : > { %3135 = vmatprep.subr.mxu0 %v3429_v0  ;;  %3160 = vmatprep.subr.mxu1 %v3429_v0 }
 0x202   : > { %3136 = vmatpush3.msra.mxu0 %v1451_v11  ;;  %3161 = vmatpush3.msra.mxu1 %v2588_v25  ;;  %v1971_v24 = vsel %vm822_vm3, %v1968_v32, %v1970_v41 }
 0x203   : > { %3137 = vmatprep.subr.mxu0 %v3429_v0  ;;  %3162 = vmatprep.subr.mxu1 %v3429_v0 }
 0x204   : > { %3138 = vmatpush3.msra.mxu0 %v1450_v37  ;;  %3163 = vmatpush3.msra.mxu1 %v2587_v26 }
 0x205   : > { %3139 = vmatprep.subr.mxu0 %v3429_v0  ;;  %3164 = vmatprep.subr.mxu1 %v3429_v0 }
 0x206   : > { %3140 = vmatpush3.msra.mxu0 %v1449_v62  ;;  %3141 = vmatprep.mubr.msk.f32.mxu0 %vm3430_vm0, %v3429_v0 }
 0x207   : > { %3165 = vmatpush3.msra.mxu1 %v2586_v9  ;;  %3142 = vmatmul.mubr.msk.f32.vlgmr.msra.gmra.mxu0 %vm1411_vm5, %v1404_v1  ;;  %v2583_v1 = vld [vmem:[%s4514_s7 + $0x128] sm:$0xff]  ;;  %v2116_v9 = vld [vmem:[%s4517_s10 + $0x38] sm:$0xff] }
 0x208   : > { %3166 = vmatprep.subr.mxu1 %v3429_v0  ;;  %3191 = vmatprep.subr.mxu0 %v3429_v0 }
 0x209   : > { %3167 = vmatpush3.msra.mxu1 %v2585_v31  ;;  %3192 = vmatpush3.msra.mxu0 %v2601_v43  ;;  %v2629_v31 = vld [vmem:[%s4517_s10 + $0x78] sm:$0xff] }
 0x20a   : > { %3168 = vmatprep.subr.mxu1 %v3429_v0  ;;  %3193 = vmatprep.subr.mxu0 %v3429_v0  ;;  %v2112_v43 = vld [vmem:[%s4517_s10 + $0x18] sm:$0xff] }
 0x20b   : > { %3144 = vmatprep.mubr.msk.f32.mxu0 %vm3430_vm0, %v3429_v0  ;;  %3169 = vmatpush3.msra.mxu1 %v2584_v36  ;;  %v2111_v36 = vld [vmem:[%s4517_s10 + $0x10] sm:$0xff] }
 0x20c   : > { %3194 = vmatpush3.msra.mxu0 %v2600_v60  ;;  %3170 = vmatprep.subr.mxu1 %v3429_v0  ;;  %v2110_v60 = vld [vmem:[%s4517_s10 + $0x8] sm:$0xff] }
 0x20d   : > { %3145 = vmatmul.mubr.f32.gmra.mxu0 %v3779_v16  ;;  %3195 = vmatprep.subr.mxu0 %v3429_v0  ;;  %v2581_v16 = vld [vmem:[%s4514_s7 + $0x118] sm:$0xff] }
 0x20e   : > { %3171 = vmatpush3.msra.mxu1 %v2583_v1  ;;  %3196 = vmatpush3.msra.mxu0 %v2599_v44  ;;  %v2626_v1 = vld [vmem:[%s4517_s10 + $0x60] sm:$0xff] }
 0x20f   : > { %3172 = vmatprep.subr.mxu1 %v3429_v0  ;;  %3197 = vmatprep.subr.mxu0 %v3429_v0  ;;  %v2109_v44 = vld [vmem:[%s4517_s10] sm:$0xff] }
 0x210   : > { %3147 = vmatprep.mubr.msk.f32.mxu0 %vm3430_vm0, %v3429_v0  ;;  %3173 = vmatpush3.msra.mxu1 %v2582_v48  ;;  %v2622_v48 = vld [vmem:[%s4517_s10 + $0x40] sm:$0xff] }
 0x211   : > { %3198 = vmatpush3.msra.mxu0 %v2598_v49  ;;  %3174 = vmatprep.subr.mxu1 %v3429_v0  ;;  %v4398_v49 = vld [vmem:[%s4517_s10 + $0xb8] sm:$0xff] }
 0x212   : > { %3148 = vmatmul.mubr.msk.f32.gmra.mxu0 %vm1416_vm7, %v1406_v28  ;;  %3199 = vmatprep.subr.mxu0 %v3429_v0  ;;  %v2595_v28 = vld [vmem:[%s4515_s8 + $0x48] sm:$0xff] }
 0x213   : > { %3175 = vmatpush3.msra.mxu1 %v2581_v16  ;;  %3200 = vmatpush3.msra.mxu0 %v2597_v50 }
 0x214   : > { %3176 = vmatprep.subr.mxu1 %v3429_v0  ;;  %3201 = vmatprep.subr.mxu0 %v3429_v0 }
 0x215   : > { %3177 = vmatpush3.msra.mxu1 %v2580_v53  ;;  %3202 = vmatpush3.msra.mxu0 %v2596_v54 }
 0x216   : > { %3178 = vmatprep.subr.mxu1 %v3429_v0  ;;  %3203 = vmatprep.subr.mxu0 %v3429_v0 }
 0x217   : > { %3179 = vmatpush3.msra.mxu1 %v2579_v19  ;;  %3204 = vmatpush3.msra.mxu0 %v2595_v28 }
 0x218   : > { %3180 = vmatprep.subr.mxu1 %v3429_v0  ;;  %3205 = vmatprep.subr.mxu0 %v3429_v0 }
 0x219   : > { %3181 = vmatpush3.msra.mxu1 %v2578_v58  ;;  %3182 = vmatprep.mubr.msk.f32.mxu1 %vm3430_vm0, %v3429_v0 }
 0x21a   : > { %3206 = vmatpush3.msra.mxu0 %v2594_v61  ;;  %3207 = vmatprep.mubr.msk.f32.mxu0 %vm3430_vm0, %v3429_v0 }
 0x21b   : > { %3183 = vmatmul.mubr.f32.vlgmr.msra.gmra.mxu1 %v3809_v33  ;;  %3208 = vmatmul.mubr.msk.f32.vlgmr.msra.gmra.mxu0 %vm693_vm2, %v1783_v63  ;;  %v1766_v33 = vld [vmem:[%s4515_s8 + $0x28] sm:$0xff] }
 0x21c   : > { %3216 = vmatprep.subr.mxu0 %v3429_v0  ;;  %3241 = vmatprep.subr.mxu1 %v3429_v0 }
 0x21d   : > { %3217 = vmatpush3.msra.mxu0 %v1768_v3  ;;  %3242 = vmatpush3.msra.mxu1 %v2615_v4 }
 0x21e   : > { %3218 = vmatprep.subr.mxu0 %v3429_v0  ;;  %3243 = vmatprep.subr.mxu1 %v3429_v0 }
 0x21f   : > { %3185 = vmatprep.mubr.msk.f32.mxu1 %vm3430_vm0, %v3429_v0  ;;  %3219 = vmatpush3.msra.mxu0 %v1767_v5 }
 0x220   : > { %3244 = vmatpush3.msra.mxu1 %v2614_v8  ;;  %3220 = vmatprep.subr.mxu0 %v3429_v0 }
 0x221   : > { %3186 = vmatmul.mubr.f32.gmra.mxu1 %v3842_v42  ;;  %3245 = vmatprep.subr.mxu1 %v3429_v0  ;;  %v1764_v42 = vld [vmem:[%s4515_s8 + $0x18] sm:$0xff] }
 0x222   : > { %3210 = vmatprep.mubr.msk.f32.mxu0 %vm3430_vm0, %v3429_v0  ;;  %3221 = vmatpush3.msra.mxu0 %v1766_v33 }
 0x223   : > { %3246 = vmatpush3.msra.mxu1 %v2613_v10  ;;  %3211 = vmatmul.mubr.msk.f32.gmra.mxu0 %vm693_vm2, %v1785_v12 }
 0x224   : > { %3222 = vmatprep.subr.mxu0 %v3429_v0  ;;  %3247 = vmatprep.subr.mxu1 %v3429_v0 }
 0x225   : > { %3188 = vmatprep.mubr.msk.f32.mxu1 %vm3430_vm0, %v3429_v0  ;;  %3223 = vmatpush3.msra.mxu0 %v1765_v13 }
 0x226   : > { %3248 = vmatpush3.msra.mxu1 %v2612_v14  ;;  %3224 = vmatprep.subr.mxu0 %v3429_v0 }
 0x227   : > { %3189 = vmatmul.mubr.f32.gmra.mxu1 %v1673_v38  ;;  %3249 = vmatprep.subr.mxu1 %v3429_v0  ;;  %v2609_v38 = vld [vmem:[%s4515_s8 + $0x88] sm:$0xff] }
 0x228   : > { %3213 = vmatprep.mubr.msk.f32.mxu0 %vm3430_vm0, %v3429_v0  ;;  %3225 = vmatpush3.msra.mxu0 %v1764_v42 }
 0x229   : > { %3250 = vmatpush3.msra.mxu1 %v2611_v15  ;;  %3214 = vmatmul.mubr.msk.f32.gmra.mxu0 %vm693_vm2, %v1784_v7 }
 0x22a   : > { %3226 = vmatprep.subr.mxu0 %v3429_v0  ;;  %3251 = vmatprep.subr.mxu1 %v3429_v0 }
 0x22b   : > { %3227 = vmatpush3.msra.mxu0 %v1763_v17  ;;  %3252 = vmatpush3.msra.mxu1 %v2610_v18 }
 0x22c   : > { %3228 = vmatprep.subr.mxu0 %v3429_v0  ;;  %3253 = vmatprep.subr.mxu1 %v3429_v0 }
 0x22d   : > { %3229 = vmatpush3.msra.mxu0 %v1762_v35  ;;  %3254 = vmatpush3.msra.mxu1 %v2609_v38 }
 0x22e   : > { %3230 = vmatprep.subr.mxu0 %v3429_v0  ;;  %3255 = vmatprep.subr.mxu1 %v3429_v0 }
 0x22f   : > { %3231 = vmatpush3.msra.mxu0 %v1761_v21  ;;  %3232 = vmatprep.mubr.msk.f32.mxu0 %vm3430_vm0, %v3429_v0 }
 0x230   : > { %3256 = vmatpush3.msra.mxu1 %v2608_v22  ;;  %3257 = vmatprep.mubr.msk.f32.mxu1 %vm3430_vm0, %v3429_v0 }
 0x231   : > { %3233 = vmatmul.mubr.msk.f32.vlgmr.msra.gmra.mxu0 %vm693_vm2, %v4197_v51  ;;  %3258 = vmatmul.mubr.msk.f32.vlgmr.msra.gmra.mxu1 %vm693_vm2, %v1969_v23 }
 0x232   : > { %3235 = vmatprep.mubr.msk.f32.mxu0 %vm3430_vm0, %v3429_v0  ;;  %3260 = vmatprep.mubr.msk.f32.mxu1 %vm3430_vm0, %v3429_v0 }
 0x233   : > { %3285 = vmatprep.subr.mxu1 %v2116_v9  ;;  %3266 = vmatprep.subr.mxu0 %v2629_v31 }
 0x234   : > { %3286 = vmatpush3.msra.mxu1 %v2116_v9  ;;  %3267 = vmatpush3.msra.mxu0 %v2629_v31 }
 0x235   : > { %3236 = vmatmul.mubr.msk.f32.gmra.mxu0 %vm693_vm2, %v4185_v46  ;;  %3261 = vmatmul.mubr.msk.f32.gmra.mxu1 %vm693_vm2, %v1971_v24 }
 0x236   : > { %3238 = vmatprep.mubr.msk.f32.mxu0 %vm3430_vm0, %v3429_v0  ;;  %3263 = vmatprep.mubr.msk.f32.mxu1 %vm3430_vm0, %v3429_v0  ;;  %v2115_v0 = vld [vmem:[%s4517_s10 + $0x30] sm:$0xff] }
 0x237   : > { %3287 = vmatprep.subr.mxu1 %v2115_v0  ;;  %3268 = vmatprep.subr.mxu0 %v2628_v34 }
 0x238   : > { %3288 = vmatpush3.msra.mxu1 %v2115_v0  ;;  %3269 = vmatpush3.msra.mxu0 %v2628_v34 }
 0x239   : > { %3239 = vmatmul.mubr.msk.f32.gmra.mxu0 %vm693_vm2, %v4236_v2  ;;  %3264 = vmatmul.mubr.msk.f32.gmra.mxu1 %vm693_vm2, %v1970_v41 }
 0x23a   : > { %3289 = vmatprep.subr.mxu1 %v2114_v29  ;;  %3270 = vmatprep.subr.mxu0 %v2627_v39 }
 0x23b   : > { %3290 = vmatpush3.msra.mxu1 %v2114_v29  ;;  %3271 = vmatpush3.msra.mxu0 %v2627_v39 }
 0x23c   : > { %3291 = vmatprep.subr.mxu1 %v2113_v30  ;;  %3272 = vmatprep.subr.mxu0 %v2626_v1 }
 0x23d   : > { %3292 = vmatpush3.msra.mxu1 %v2113_v30  ;;  %3273 = vmatpush3.msra.mxu0 %v2626_v1  ;;  %v2619_v30 = vld [vmem:[%s4516_s9] ss:$0 sm:$0xff] }
 0x23e   : > { %3293 = vmatprep.subr.mxu1 %v2112_v43  ;;  %3274 = vmatprep.subr.mxu0 %v2625_v40 }
 0x23f   : > { %3294 = vmatpush3.msra.mxu1 %v2112_v43  ;;  %3275 = vmatpush3.msra.mxu0 %v2625_v40 }
 0x240   : > { %3295 = vmatprep.subr.mxu1 %v2111_v36  ;;  %3276 = vmatprep.subr.mxu0 %v2624_v45 }
 0x241   : > { %3296 = vmatpush3.msra.mxu1 %v2111_v36  ;;  %3277 = vmatpush3.msra.mxu0 %v2624_v45 }
 0x242   : > { %3297 = vmatprep.subr.mxu1 %v2110_v60  ;;  %3278 = vmatprep.subr.mxu0 %v2623_v47 }
 0x243   : > { %3298 = vmatpush3.msra.mxu1 %v2110_v60  ;;  %3279 = vmatpush3.msra.mxu0 %v2623_v47  ;;  %v2620_v60 = vld [vmem:[%s4523_s16] ss:$0 sm:$0xff] }
 0x244   : > { %3299 = vmatprep.subr.mxu1 %v2109_v44  ;;  %3280 = vmatprep.subr.mxu0 %v2622_v48 }
 0x245   : > { %3300 = vmatpush3.msra.mxu1 %v2109_v44  ;;  %3281 = vmatpush3.msra.mxu0 %v2622_v48 }
 0x246   : > { %3304 = vmatprep.subr.mxu0 %v4398_v49 }
 0x270   : > { %v2940_v11 = vpop.f32.mrf.mxu0  ;;  %v2975_v25 = vpop.f32.mrf.mxu1 }
 0x271   : > { %v985_v37 = vadd.f32 %v2975_v25, %v2940_v11 }
 0x272   : > { %v896_v26 = vpop.f32.mrf.mxu0  ;;  %v979_v27 = vpop.f32.mrf.mxu1 }
 0x273   : > { %v980_v62 = vadd.f32 %v979_v27, %v896_v26 }
 0x282   : > { %v3029_v46 = vpop.f32.mrf.mxu1 }
 0x284   : > { %v1185_v16 = vpop.f32.mrf.mxu1 }
 0x292   : > { %v3010_v50 = vpop.f32.mrf.mxu0  ;;  %v3048_v51 = vpop.f32.mrf.mxu1 }
 0x293   : > { %v1089_v52 = vadd.f32 %v3010_v50, %v985_v37  ;;  %v1275_v53 = vadd.f32 %v3048_v51, %v3029_v46 }
 0x294   : > { %v1079_v54 = vpop.f32.mrf.mxu0  ;;  %v1269_v19 = vpop.f32.mrf.mxu1 }
 0x295   : > { %v1088_v28 = vadd.f32 %v1079_v54, %v980_v62  ;;  %v1270_v55 = vadd.f32 %v1269_v19, %v1185_v16  ;;  %v2621_v16 = vld [vmem:[%s4524_s17] ss:$0 sm:$0xff] }
 0x2a3   : > { %v3067_v56 = vpop.f32.mrf.mxu0 }
 0x2a4   : > { %v1372_v57 = vadd.f32 %v3067_v56, %v1275_v53 }
 0x2a5   : > { %v1362_v58 = vpop.f32.mrf.mxu0 }
 0x2a6   : > { %v4401_v61 = vadd.f32 %v1372_v57, %v1089_v52  ;;  %v1371_v63 = vadd.f32 %v1362_v58, %v1270_v55 }
 0x2a8   : > { %v4403_v2 = vadd.f32 %v1371_v63, %v1088_v28 }
 0x2b4   : > { %v1559_v3 = vpop.f32.mrf.mxu1 }
 0x2b6   : > { %v3102_v4 = vpop.f32.mrf.mxu1 }
 0x2ba   : > { %v1564_v5 = vpop.f32.mrf.mxu1 }
 0x2bc   : > { %v3105_v7 = vpop.f32.mrf.mxu1 }
 0x2bf   : > { %v1569_v8 = vpop.f32.mrf.mxu1 }
 0x2c1   : > { %v3108_v33 = vpop.f32.mrf.mxu1 }
 0x2c7   : > { %v1639_v10 = vpop.f32.mrf.mxu0 }
 0x2c8   : > { %v1640_v26 = vadd.f32 %v1639_v10, %v1559_v3 }
 0x2c9   : > { %v3143_v12 = vpop.f32.mrf.mxu0 }
 0x2cd   : > { %v1644_v13 = vpop.f32.mrf.mxu0 }
 0x2ce   : > { %v1645_v34 = vadd.f32 %v1644_v13, %v1564_v5 }
 0x2cf   : > { %v3146_v14 = vpop.f32.mrf.mxu0 }
 0x2d2   : > { %v1649_v42 = vpop.f32.mrf.mxu0 }
 0x2d3   : > { %v1650_v50 = vadd.f32 %v1649_v42, %v1569_v8 }
 0x2d4   : > { %v3149_v15 = vpop.f32.mrf.mxu0 }
 0x2db   : > { %v1744_v17 = vpop.f32.mrf.mxu1  ;;  %v1858_v18 = vpop.f32.mrf.mxu0 }
 0x2dc   : > { %v1758_v0 = vadd.f32 %v1744_v17, %v1640_v26 }
 0x2dd   : > { %v3184_v35 = vpop.f32.mrf.mxu1  ;;  %v3209_v38 = vpop.f32.mrf.mxu0 }
 0x2de   : > { %v2640_v38 = vld [vmem:[%s4517_s10 + $0xb0] sm:$0xff] }
 0x2e1   : > { %v1749_v20 = vpop.f32.mrf.mxu1 }
 0x2e2   : > { %v1759_v40 = vadd.f32 %v1749_v20, %v1645_v34 }
 0x2e3   : > { %v3187_v32 = vpop.f32.mrf.mxu1  ;;  %v1863_v21 = vpop.f32.mrf.mxu0 }
 0x2e4   : > { %v2638_v32 = vld [vmem:[%s4517_s10 + $0xa0] sm:$0xff] }
 0x2e5   : > { %v3212_v22 = vpop.f32.mrf.mxu0 }
 0x2e6   : > { %v2635_v22 = vld [vmem:[%s4517_s10 + $0x88] sm:$0xff] }
 0x2e7   : > { %v1754_v23 = vpop.f32.mrf.mxu1 }
 0x2e8   : > { %v1760_v28 = vadd.f32 %v1754_v23, %v1650_v50  ;;  %v2634_v23 = vld [vmem:[%s4517_s10 + $0x80] sm:$0xff] }
 0x2e9   : > { %v3190_v41 = vpop.f32.mrf.mxu1  ;;  %v1868_v24 = vpop.f32.mrf.mxu0 }
 0x2eb   : > { %v3215_v11 = vpop.f32.mrf.mxu0 }
 0x2f1   : > { %v1944_v25 = vpop.f32.mrf.mxu0  ;;  %v2044_v37 = vpop.f32.mrf.mxu1 }
 0x2f2   : > { %v1945_v27 = vadd.f32 %v1944_v25, %v1858_v18 }
 0x2f3   : > { %v3234_v62 = vpop.f32.mrf.mxu0  ;;  %v3259_v9 = vpop.f32.mrf.mxu1 }
 0x2f4   : > { %v2058_v29 = vadd.f32 %v2044_v37, %v1945_v27  ;;  %v2555_v27 = vld [vmem:[%s4513_s6] ss:$0 sm:$0xff] }
 0x2f5   : > { %v1949_v31 = vpop.f32.mrf.mxu0  ;;  %v2049_v43 = vpop.f32.mrf.mxu1 }
 0x2f6   : > { %v2061_v36 = vadd.f32 %v2058_v29, %v1758_v0  ;;  %v1950_v39 = vadd.f32 %v1949_v31, %v1863_v21  ;;  %v2637_v21 = vld [vmem:[%s4517_s10 + $0x98] sm:$0xff]  ;;  %v2644_v0 = vld [vmem:[%s4518_s11] ss:$0 sm:$0xff] }
 0x2f7   : > { %v3237_v1 = vpop.f32.mrf.mxu0  ;;  %v3262_v44 = vpop.f32.mrf.mxu1 }
 0x2f8   : > { %v2071_v45 = vadd.f32 %v2619_v30, %v2061_v36  ;;  %v2059_v47 = vadd.f32 %v2049_v43, %v1950_v39  ;;  %v1383_v43 = vadd.f32 %v2555_v27, %v4401_v61  ;;  %v1382_v39 = vadd.f32 %v2555_v27, %v4403_v2 }
 0x2f9   : > { %v1954_v48 = vpop.f32.mrf.mxu0  ;;  %v2054_v46 = vpop.f32.mrf.mxu1 }
 0x2fa   : > { %v2081_v51 = vmul.f32 %v2620_v60, %v2071_v45  ;;  %v2062_v52 = vadd.f32 %v2059_v47, %v1759_v40  ;;  %v1955_v53 = vadd.f32 %v1954_v48, %v1868_v24 }
 0x2fb   : > { %v3240_v54 = vpop.f32.mrf.mxu0  ;;  %v3265_v19 = vpop.f32.mrf.mxu1 }
 0x2fc   : > { %v2072_v55 = vadd.f32 %v2619_v30, %v2062_v52  ;;  %v2060_v56 = vadd.f32 %v2054_v46, %v1955_v53  ;;  %v2091_v57 = vadd.f32 %v2621_v16, %v2081_v51 }
 0x2fe   : > { %v2082_v58 = vmul.f32 %v2620_v60, %v2072_v55  ;;  %v2063_v63 = vadd.f32 %v2060_v56, %v1760_v28  ;;  %v2094_v3 = vmax.f32 %v2091_v57, 0.0 }
 0x300   : > { %v2073_v4 = vadd.f32 %v2619_v30, %v2063_v63  ;;  %v2092_v5 = vadd.f32 %v2621_v16, %v2082_v58  ;;  %v2106_v7 = vsel %vm2097_vm8, %v2094_v3, 0.0 }
 0x301   : > { %3301 = vmatprep.mubr.msk.f32.mxu1 %vm693_vm2, %v2106_v7  ;;  %v2129_v12 = vrot.slane %v2106_v7, 1  ;;  %v2301_v18 = vrot.slane %v2106_v7, 2 }
 0x302   : > { %v2083_v8 = vmul.f32 %v2620_v60, %v2073_v4  ;;  %v2095_v33 = vmax.f32 %v2092_v5, 0.0 }
 0x304   : > { %v2093_v10 = vadd.f32 %v2621_v16, %v2083_v8  ;;  %3302 = vmatmul.mubr.msk.f32.vlgmr.msra.gmra.mxu1 %vm693_vm2, %v2095_v33  ;;  %v2130_v13 = vrot.slane %v2095_v33, 1  ;;  %v2302_v15 = vrot.slane %v2095_v33, 2 }
 0x306   : > { %v2096_v14 = vmax.f32 %v2093_v10, 0.0  ;;  %v2131_v59 = vsel %vm905_vm4, %v2129_v12, %v2130_v13  ;;  %v2303_v20 = vsel %vm822_vm3, %v2301_v18, %v2302_v15 }
 0x307   : > { %3282 = vmatprep.mubr.msk.f32.mxu0 %vm693_vm2, %v2131_v59 }
 0x308   : > { %v2108_v42 = vsel %vm2102_vm9, %v2096_v14, 0.0 }
 0x309   : > { %v2132_v17 = vrot.slane %v2108_v42, 1  ;;  %v2304_v41 = vrot.slane %v2108_v42, 2 }
 0x30b   : > { %v2133_v35 = vsel %vm905_vm4, %v2130_v13, %v2132_v17  ;;  %v2305_v24 = vsel %vm822_vm3, %v2302_v15, %v2304_v41 }
 0x30c   : > { %3283 = vmatmul.mubr.msk.f32.vlgmr.msra.gmra.mxu0 %vm693_vm2, %v2133_v35 }
 0x30d   : > { %3305 = vmatpush3.msra.mxu0 %v4398_v49  ;;  %3320 = vmatprep.mubr.msk.f32.mxu0 %vm693_vm2, %v2303_v20  ;;  %v2636_v49 = vld [vmem:[%s4517_s10 + $0x90] sm:$0xff] }
 0x30e   : > { %3306 = vmatprep.subr.mxu0 %v2640_v38 }
 0x30f   : > { %3307 = vmatpush3.msra.mxu0 %v2640_v38 }
 0x310   : > { %3308 = vmatprep.subr.mxu0 %v2639_v6 }
 0x311   : > { %3309 = vmatpush3.msra.mxu0 %v2639_v6 }
 0x312   : > { %3310 = vmatprep.subr.mxu0 %v2638_v32 }
 0x313   : > { %3311 = vmatpush3.msra.mxu0 %v2638_v32 }
 0x314   : > { %3312 = vmatprep.subr.mxu0 %v2637_v21 }
 0x315   : > { %3313 = vmatpush3.msra.mxu0 %v2637_v21 }
 0x316   : > { %3314 = vmatprep.subr.mxu0 %v2636_v49 }
 0x317   : > { %3315 = vmatpush3.msra.mxu0 %v2636_v49 }
 0x318   : > { %3316 = vmatprep.subr.mxu0 %v2635_v22 }
 0x319   : > { %3317 = vmatpush3.msra.mxu0 %v2635_v22 }
 0x31a   : > { %3318 = vmatprep.subr.mxu0 %v2634_v23 }
 0x31b   : > { %3319 = vmatpush3.msra.mxu0 %v2634_v23 }
 0x31c   : > { %3321 = vmatmul.mubr.msk.f32.vlgmr.msra.gmra.mxu0 %vm693_vm2, %v2305_v24 }
 0x3c4   : > { %v3303_v25 = vpop.f32.mrf.mxu1 }
 0x3c6   : > { %v2283_v62 = vpop.f32.mrf.mxu1 }
 0x3cc   : > { %v3284_v11 = vpop.f32.mrf.mxu0 }
 0x3cd   : > { %v2289_v26 = vadd.f32 %v3303_v25, %v3284_v11 }
 0x3ce   : > { %v2204_v37 = vpop.f32.mrf.mxu0 }
 0x3cf   : > { %v2284_v29 = vadd.f32 %v2283_v62, %v2204_v37 }
 0x3dc   : > { %v3322_v9 = vpop.f32.mrf.mxu0 }
 0x3dd   : > { %v2386_v30 = vadd.f32 %v3322_v9, %v2289_v26 }
 0x3de   : > { %v2376_v31 = vpop.f32.mrf.mxu0 }
 0x3df   : > { %v2395_v34 = vadd.f32 %v2644_v0, %v2386_v30  ;;  %v2385_v36 = vadd.f32 %v2376_v31, %v2284_v29 }
 0x3e1   : > { %v2397_v60 = vadd.f32 %v2395_v34, %v1383_v43  ;;  %v2394_v1 = vadd.f32 %v2644_v0, %v2385_v36 }
 0x3e3   : > { %2399 = vst.msk [vmem:[%s581_s27 + $0x8] sm:$0xff] %vm693_vm2, %v2397_v60  ;;  %v2396_v61 = vadd.f32 %v2394_v1, %v1382_v39 }
 0x3e5   : > { %2398 = vst.msk [vmem:[%s581_s27] sm:$0xff] %vm693_vm2, %v2396_v61 }
 0x3e6   : > { %3380 = shalt.err (!%p3377_p3)
}
 0x3e7   : > { %s3381_s1 = scalar_lea.hbm %s4461_s23, 256  ;;  %s3385_s20 = scalar_lea.hbm %s4552_s22, 512 }
 0x3e8   : > { %p3382_p4 = scmp.ne.s32.totalorder %s4461_s23, %s3381_s1  ;;  %p3386_p9 = scmp.lt.s32.totalorder %s4461_s23, %s4552_s22 }
 0x3e9   : > { %p3387_p10 = scmp.lt.s32.totalorder %s3385_s20, %s3381_s1 }
 0x3ea   : > { %p3383_p7 = pnand %p3382_p4, %p3567_p5 }
 0x3eb   : > { %p3388_p11 = por %p3387_p10, %p3386_p9 }
 0x3ec   : > { %p3384_p8 = pneg %p3383_p7 }
 0x3ee   : > { %p3389_p12 = pnand %p3388_p11, %p3384_p8 }
 0x3f0   : > { %3392 = shalt.err (!%p3389_p12)
}
 0x3f1   : > { %s3432_s19 = smov 128   ;;  %s3433_s25 = smov 8  }
 0x3f2   : > { %3324 = dma.vmem_to_hbm [thread:$0]  (%p3567_p5), %s4463_s24, 256, %s4461_s23, %s4467_s0, %s3432_s19, %s3432_s19, %s3433_s25  }
 0x3f3 PF: > { %s4553_s26 = sld [smem:[#allocation7_spill]] }
 0x3f4   : > { %s4554_s27 = sld [smem:[#allocation5_spill]] }
 0x3f9   : > { %p3330_p13 = scmp.ge.s32.totalorder %s4553_s26, 2 }
 0x3fa   : > { %s2429_s3 = sand.u32 1, %s4554_s27  }
 0x3fb   : > { %p3327_p0 = pnand %p3330_p13, %p3571_p6  ;;  %s2430_s1 = scalar_lea.sflag [#allocation3], %s2429_s3 }
 0x3fd   : > { %p3328_p1 = pneg %p3327_p0 }
 0x3ff   : > { %3410 = dma.done.wait (%p3328_p1), %s2430_s1, 256  }
 0x400   : > { %3412 = vsyncadd (%p3328_p1), %s2430_s1, 4294967040  ;;  %s4556_s30 = sld [smem:[#allocation8_spill]]  ;;  %s4559_s27 = smov %s3419_s28 }
 0x401   : > { %s4557_s20 = sld [smem:[#allocation6_spill]] }
 0x402   : > { %s4558_s29 = sld [smem:[#allocation9_spill]] }
 0x406   : > { %p28_p2 = scmp.ge.s32.totalorder %s4556_s30, 4  }
 0x407   : > { %s4560_s28 = smov %s4557_s20 }
 0x408   :  { %30 = sbr.rel (!%p28_p2) target bundleno = 9 (0x9), region = 140 }
 0x40d   :  { %2435 = vsyncpa [#allocation3], 1 }
 0x40e   :  { %2437 = vsyncpa [#allocation3 + $0x1], 1 }

</bundles_post_ra>
